<compile_context>
chip_gen: v7x
topology: tpu7x:2x2x1
jax: 0.10.0
libtpu: 0.0.40
codegen_flags: <defaults>
</compile_context>

<pallas_src>
import jax
import jax.numpy as jnp
from jax.experimental import pallas as pl
from jax.experimental.pallas import tpu as pltpu


def _attention_kernel(hT_ref, encT_ref, whT_ref, weT_ref, b_ref, v_ref,
                      ctxT_ref, attwT_ref):
    # One grid step == one batch tile of BT columns (batch on the lane axis).
    Tx = encT_ref.shape[0]

    hT = hT_ref[...]                         # (Ddec, BT)
    whT = whT_ref[...]                       # (A, Ddec)
    weT = weT_ref[...]                       # (A, Denc)
    v_col = v_ref[...]                       # (A, 1)

    # h-projection once per batch column; bias folded here.  (A, BT) on the MXU.
    hb = jnp.dot(whT, hT, preferred_element_type=jnp.float32) + b_ref[...]

    # scores (Tx, BT): per-timestep 2-D MXU matmul; tanh and the A-reduction run
    # lane-dense.  Unrolled static loop keeps everything 2-D (no 3-D dot_general,
    # no layout-changing reshape).
    rows = []
    for t in range(Tx):
        e_t = jnp.dot(weT, encT_ref[t], preferred_element_type=jnp.float32)   # (A, BT)
        en_t = jnp.tanh(e_t + hb)                                             # (A, BT)
        rows.append(jnp.sum(en_t * v_col, axis=0, keepdims=True))             # (1, BT)
    scores = jnp.concatenate(rows, axis=0)                                    # (Tx, BT)

    # Numerically-stable softmax over Tx (sublane axis); batch stays on lanes.
    m = jnp.max(scores, axis=0, keepdims=True)                                # (1, BT)
    ex = jnp.exp(scores - m)                                                  # (Tx, BT)
    denom = jnp.sum(ex, axis=0, keepdims=True)                                # (1, BT)
    w = ex * pl.reciprocal(denom, approx=False)                               # (Tx, BT)

    # context (Denc, BT): weighted sum over Tx, pure 2-D VPU work, lane-dense.
    ctxT = w[0:1, :] * encT_ref[0]
    for t in range(1, Tx):
        ctxT = ctxT + w[t:t + 1, :] * encT_ref[t]

    ctxT_ref[...] = ctxT.astype(ctxT_ref.dtype)
    attwT_ref[...] = w.astype(attwT_ref.dtype)


def _round_up(x, m):
    return ((x + m - 1) // m) * m


def _tensorcores_per_chip():
    """2 TensorCores per chip on v7x; 1 on v5e/v6e (and a safe default)."""
    try:
        kind = jax.devices()[0].device_kind.lower().replace(" ", "")
    except Exception:
        return 1
    if "v7" in kind or "tpu7" in kind:
        return 2
    return 1


def attention_forward(hidden, encoder_outputs, W, b, v, *, max_block_b=None):
    """hidden: (B, Ddec), encoder_outputs: (B, Tx, Denc),
       W: (Ddec+Denc, A), b: (A,), v: (A, 1).
       Returns (context (B, Denc), attention_weights (B, Tx))."""
    B, Ddec = hidden.shape
    Be, Tx, Denc = encoder_outputs.shape
    assert Be == B
    A = W.shape[1]

    # Pre-transposed parameters (layout plumbing only).
    WhT = W[:Ddec].T                       # (A, Ddec)
    WeT = W[Ddec:].T                       # (A, Denc)
    b_col = b.reshape(A, 1)
    v_col = v.reshape(A, 1)

    # Batch-on-lanes operands.
    hT = hidden.T                                      # (Ddec, B)
    encT = jnp.transpose(encoder_outputs, (1, 2, 0))   # (Tx, Denc, B)

    # Tile the batch: minimum number of steps that covers the TensorCores
    # (1 on v5e/v6e, 2 on v7x), lane-aligned to 128.
    ncores = _tensorcores_per_chip()
    BT = _round_up(-(-B // ncores), 128)

    # VMEM guard: cap BT so the double-buffered enc/h blocks, the outputs and
    # the live intermediates stay well under the scoped VMEM budget (v7x has
    # only 64 MiB physical VMEM; keep generous headroom).
    per_col_bytes = 4 * (2 * Tx * Denc + 2 * Ddec + 2 * (Denc + Tx)
                         + 2 * A + 3 * Tx + Denc)
    vmem_budget = 24 << 20
    cap = max(128, (vmem_budget // max(per_col_bytes, 1)) // 128 * 128)
    BT = min(BT, cap)
    if max_block_b is not None:
        BT = min(BT, max(128, (max_block_b // 128) * 128))

    Bp = _round_up(B, BT)
    if Bp != B:
        pad = Bp - B
        hT = jnp.pad(hT, ((0, 0), (0, pad)))
        encT = jnp.pad(encT, ((0, 0), (0, 0), (0, pad)))
    nsteps = Bp // BT

    out_shape = (
        jax.ShapeDtypeStruct((Denc, Bp), jnp.float32),   # context^T
        jax.ShapeDtypeStruct((Tx, Bp), jnp.float32),     # attention_weights^T
    )

    grid_spec = pltpu.PrefetchScalarGridSpec(
        num_scalar_prefetch=0,
        grid=(nsteps,),
        in_specs=[
            pl.BlockSpec((Ddec, BT),     lambda i: (0, i)),
            pl.BlockSpec((Tx, Denc, BT), lambda i: (0, 0, i)),
            pl.BlockSpec((A, Ddec),      lambda i: (0, 0)),
            pl.BlockSpec((A, Denc),      lambda i: (0, 0)),
            pl.BlockSpec((A, 1),         lambda i: (0, 0)),
            pl.BlockSpec((A, 1),         lambda i: (0, 0)),
        ],
        out_specs=[
            pl.BlockSpec((Denc, BT), lambda i: (0, i)),
            pl.BlockSpec((Tx, BT),   lambda i: (0, i)),
        ],
    )

    ctxT, attwT = pl.pallas_call(
        _attention_kernel,
        out_shape=out_shape,
        grid_spec=grid_spec,
        compiler_params=pltpu.CompilerParams(
            dimension_semantics=("parallel",)),
    )(hT, encT, WhT, WeT, b_col, v_col)

    ctx = ctxT.T[:B]      # (B, Denc)
    attw = attwT.T[:B]    # (B, Tx)
    return ctx, attw


def attention_reference(hidden, encoder_outputs, W, b, v):
    """Plain-JAX reference mirroring the PyTorch forward exactly."""
    B, Tx, Denc = encoder_outputs.shape
    h_rep = jnp.broadcast_to(hidden[:, None, :], (B, Tx, hidden.shape[-1]))
    concat = jnp.concatenate([h_rep, encoder_outputs], axis=2)
    energy = jnp.tanh(concat @ W + b)
    attention = (energy @ v)[..., 0]                      # (B, Tx)
    attw = jax.nn.softmax(attention, axis=1)
    context = jnp.einsum("bt,btd->bd", attw, encoder_outputs)
    return context, attw


if __name__ == "__main__":
    # Small shapes consistent with the module; B=256 gives one grid step on
    # v5e/v6e and two parallel steps (both TensorCores) on v7x.
    B, Tx, Ddec, Denc, A = 256, 8, 32, 32, 64

    key = jax.random.PRNGKey(0)
    k_h, k_enc, k_W, k_b, k_v = jax.random.split(key, 5)

    hidden = jax.random.normal(k_h, (B, Ddec), dtype=jnp.float32)
    encoder_outputs = jax.random.normal(k_enc, (B, Tx, Denc), dtype=jnp.float32)

    # Parameters match nn.Linear(Ddec+Denc, A) and nn.Linear(A, 1, bias=False),
    # stored already transposed for y = x @ W.
    W = jax.random.normal(k_W, (Ddec + Denc, A), dtype=jnp.float32) * 0.1
    b = jax.random.normal(k_b, (A,), dtype=jnp.float32) * 0.1
    v = jax.random.normal(k_v, (A, 1), dtype=jnp.float32) * 0.1

    ctx, attw = attention_forward(hidden, encoder_outputs, W, b, v)
    jax.block_until_ready((ctx, attw))

    ctx_ref, attw_ref = attention_reference(hidden, encoder_outputs, W, b, v)
    assert ctx.shape == (B, Denc) and attw.shape == (B, Tx)
    assert jnp.allclose(ctx, ctx_ref, atol=1e-5, rtol=1e-5)
    assert jnp.allclose(attw, attw_ref, atol=1e-5, rtol=1e-5)

    print("KERNEL_OK")
</pallas_src>

<mosaic_0001>
module attributes {stable_mosaic.version = 11 : i64} {
  func.func @_attention_kernel(%arg0: i32, %arg1: memref<32x256xf32, #tpu.memory_space<vmem>>, %arg2: memref<8x32x256xf32, #tpu.memory_space<vmem>>, %arg3: memref<64x32xf32, #tpu.memory_space<vmem>>, %arg4: memref<64x32xf32, #tpu.memory_space<vmem>>, %arg5: memref<64x1xf32, #tpu.memory_space<vmem>>, %arg6: memref<64x1xf32, #tpu.memory_space<vmem>>, %arg7: memref<32x256xf32, #tpu.memory_space<vmem>>, %arg8: memref<8x256xf32, #tpu.memory_space<vmem>>) attributes {dimension_semantics = [#tpu.dimension_semantics<parallel>], iteration_bounds = array<i64: 1>, scalar_prefetch = 0 : i64, scratch_operands = 0 : i64, tpu.core_type = #tpu.core_type<tc>, window_params = [{transform_indices = @transform_0, window_bounds = array<i64: 32, 256>}, {transform_indices = @transform_1, window_bounds = array<i64: 8, 32, 256>}, {pipeline_mode = #tpu.pipeline_mode<synchronous>, transform_indices = @transform_2, window_bounds = array<i64: 64, 32>}, {pipeline_mode = #tpu.pipeline_mode<synchronous>, transform_indices = @transform_3, window_bounds = array<i64: 64, 32>}, {pipeline_mode = #tpu.pipeline_mode<synchronous>, transform_indices = @transform_4, window_bounds = array<i64: 64, 1>}, {pipeline_mode = #tpu.pipeline_mode<synchronous>, transform_indices = @transform_5, window_bounds = array<i64: 64, 1>}, {transform_indices = @transform_6, window_bounds = array<i64: 32, 256>}, {transform_indices = @transform_7, window_bounds = array<i64: 8, 256>}]} {
    %c0 = arith.constant 0 : index
    %c0_0 = arith.constant 0 : index
    %0 = vector.load %arg1[%c0, %c0_0] : memref<32x256xf32, #tpu.memory_space<vmem>>, vector<32x256xf32>
    %c0_1 = arith.constant 0 : index
    %c0_2 = arith.constant 0 : index
    %1 = vector.load %arg3[%c0_1, %c0_2] : memref<64x32xf32, #tpu.memory_space<vmem>>, vector<64x32xf32>
    %c0_3 = arith.constant 0 : index
    %c0_4 = arith.constant 0 : index
    %2 = vector.load %arg4[%c0_3, %c0_4] : memref<64x32xf32, #tpu.memory_space<vmem>>, vector<64x32xf32>
    %c0_5 = arith.constant 0 : index
    %c0_6 = arith.constant 0 : index
    %3 = vector.load %arg6[%c0_5, %c0_6] : memref<64x1xf32, #tpu.memory_space<vmem>>, vector<64x1xf32>
    %cst = arith.constant dense<0.000000e+00> : vector<64x256xf32>
    %4 = tpu.matmul %1, %0, %cst {dimension_numbers = #tpu.dot_dimension_numbers<[1], [0], [0], [1], [0, 0, 1, 1], [], []>} : vector<64x32xf32>, vector<32x256xf32>, vector<64x256xf32> -> vector<64x256xf32>
    %c0_7 = arith.constant 0 : index
    %c0_8 = arith.constant 0 : index
    %5 = vector.load %arg5[%c0_7, %c0_8] : memref<64x1xf32, #tpu.memory_space<vmem>>, vector<64x1xf32>
    %6 = vector.broadcast %5 : vector<64x1xf32> to vector<64x256xf32>
    %7 = arith.addf %4, %6 : vector<64x256xf32>
    %c0_9 = arith.constant 0 : index
    %c0_10 = arith.constant 0 : index
    %c0_11 = arith.constant 0 : index
    %8 = vector.load %arg2[%c0_9, %c0_10, %c0_11] : memref<8x32x256xf32, #tpu.memory_space<vmem>>, vector<1x32x256xf32>
    %9 = vector.shape_cast %8 : vector<1x32x256xf32> to vector<32x256xf32>
    %cst_12 = arith.constant dense<0.000000e+00> : vector<64x256xf32>
    %10 = tpu.matmul %2, %9, %cst_12 {dimension_numbers = #tpu.dot_dimension_numbers<[1], [0], [0], [1], [0, 0, 1, 1], [], []>} : vector<64x32xf32>, vector<32x256xf32>, vector<64x256xf32> -> vector<64x256xf32>
    %11 = arith.addf %10, %7 : vector<64x256xf32>
    %12 = math.tanh %11 : vector<64x256xf32>
    %13 = vector.broadcast %3 : vector<64x1xf32> to vector<64x256xf32>
    %14 = arith.mulf %12, %13 : vector<64x256xf32>
    %cst_13 = arith.constant dense<0.000000e+00> : vector<256xf32>
    %15 = vector.multi_reduction <add>, %14, %cst_13 [0] : vector<64x256xf32> to vector<256xf32>
    %16 = vector.shape_cast %15 : vector<256xf32> to vector<1x256xf32>
    %c1 = arith.constant 1 : index
    %c0_14 = arith.constant 0 : index
    %c0_15 = arith.constant 0 : index
    %17 = vector.load %arg2[%c1, %c0_14, %c0_15] : memref<8x32x256xf32, #tpu.memory_space<vmem>>, vector<1x32x256xf32>
    %18 = vector.shape_cast %17 : vector<1x32x256xf32> to vector<32x256xf32>
    %cst_16 = arith.constant dense<0.000000e+00> : vector<64x256xf32>
    %19 = tpu.matmul %2, %18, %cst_16 {dimension_numbers = #tpu.dot_dimension_numbers<[1], [0], [0], [1], [0, 0, 1, 1], [], []>} : vector<64x32xf32>, vector<32x256xf32>, vector<64x256xf32> -> vector<64x256xf32>
    %20 = arith.addf %19, %7 : vector<64x256xf32>
    %21 = math.tanh %20 : vector<64x256xf32>
    %22 = vector.broadcast %3 : vector<64x1xf32> to vector<64x256xf32>
    %23 = arith.mulf %21, %22 : vector<64x256xf32>
    %cst_17 = arith.constant dense<0.000000e+00> : vector<256xf32>
    %24 = vector.multi_reduction <add>, %23, %cst_17 [0] : vector<64x256xf32> to vector<256xf32>
    %25 = vector.shape_cast %24 : vector<256xf32> to vector<1x256xf32>
    %c2 = arith.constant 2 : index
    %c0_18 = arith.constant 0 : index
    %c0_19 = arith.constant 0 : index
    %26 = vector.load %arg2[%c2, %c0_18, %c0_19] : memref<8x32x256xf32, #tpu.memory_space<vmem>>, vector<1x32x256xf32>
    %27 = vector.shape_cast %26 : vector<1x32x256xf32> to vector<32x256xf32>
    %cst_20 = arith.constant dense<0.000000e+00> : vector<64x256xf32>
    %28 = tpu.matmul %2, %27, %cst_20 {dimension_numbers = #tpu.dot_dimension_numbers<[1], [0], [0], [1], [0, 0, 1, 1], [], []>} : vector<64x32xf32>, vector<32x256xf32>, vector<64x256xf32> -> vector<64x256xf32>
    %29 = arith.addf %28, %7 : vector<64x256xf32>
    %30 = math.tanh %29 : vector<64x256xf32>
    %31 = vector.broadcast %3 : vector<64x1xf32> to vector<64x256xf32>
    %32 = arith.mulf %30, %31 : vector<64x256xf32>
    %cst_21 = arith.constant dense<0.000000e+00> : vector<256xf32>
    %33 = vector.multi_reduction <add>, %32, %cst_21 [0] : vector<64x256xf32> to vector<256xf32>
    %34 = vector.shape_cast %33 : vector<256xf32> to vector<1x256xf32>
    %c3 = arith.constant 3 : index
    %c0_22 = arith.constant 0 : index
    %c0_23 = arith.constant 0 : index
    %35 = vector.load %arg2[%c3, %c0_22, %c0_23] : memref<8x32x256xf32, #tpu.memory_space<vmem>>, vector<1x32x256xf32>
    %36 = vector.shape_cast %35 : vector<1x32x256xf32> to vector<32x256xf32>
    %cst_24 = arith.constant dense<0.000000e+00> : vector<64x256xf32>
    %37 = tpu.matmul %2, %36, %cst_24 {dimension_numbers = #tpu.dot_dimension_numbers<[1], [0], [0], [1], [0, 0, 1, 1], [], []>} : vector<64x32xf32>, vector<32x256xf32>, vector<64x256xf32> -> vector<64x256xf32>
    %38 = arith.addf %37, %7 : vector<64x256xf32>
    %39 = math.tanh %38 : vector<64x256xf32>
    %40 = vector.broadcast %3 : vector<64x1xf32> to vector<64x256xf32>
    %41 = arith.mulf %39, %40 : vector<64x256xf32>
    %cst_25 = arith.constant dense<0.000000e+00> : vector<256xf32>
    %42 = vector.multi_reduction <add>, %41, %cst_25 [0] : vector<64x256xf32> to vector<256xf32>
    %43 = vector.shape_cast %42 : vector<256xf32> to vector<1x256xf32>
    %c4 = arith.constant 4 : index
    %c0_26 = arith.constant 0 : index
    %c0_27 = arith.constant 0 : index
    %44 = vector.load %arg2[%c4, %c0_26, %c0_27] : memref<8x32x256xf32, #tpu.memory_space<vmem>>, vector<1x32x256xf32>
    %45 = vector.shape_cast %44 : vector<1x32x256xf32> to vector<32x256xf32>
    %cst_28 = arith.constant dense<0.000000e+00> : vector<64x256xf32>
    %46 = tpu.matmul %2, %45, %cst_28 {dimension_numbers = #tpu.dot_dimension_numbers<[1], [0], [0], [1], [0, 0, 1, 1], [], []>} : vector<64x32xf32>, vector<32x256xf32>, vector<64x256xf32> -> vector<64x256xf32>
    %47 = arith.addf %46, %7 : vector<64x256xf32>
    %48 = math.tanh %47 : vector<64x256xf32>
    %49 = vector.broadcast %3 : vector<64x1xf32> to vector<64x256xf32>
    %50 = arith.mulf %48, %49 : vector<64x256xf32>
    %cst_29 = arith.constant dense<0.000000e+00> : vector<256xf32>
    %51 = vector.multi_reduction <add>, %50, %cst_29 [0] : vector<64x256xf32> to vector<256xf32>
    %52 = vector.shape_cast %51 : vector<256xf32> to vector<1x256xf32>
    %c5 = arith.constant 5 : index
    %c0_30 = arith.constant 0 : index
    %c0_31 = arith.constant 0 : index
    %53 = vector.load %arg2[%c5, %c0_30, %c0_31] : memref<8x32x256xf32, #tpu.memory_space<vmem>>, vector<1x32x256xf32>
    %54 = vector.shape_cast %53 : vector<1x32x256xf32> to vector<32x256xf32>
    %cst_32 = arith.constant dense<0.000000e+00> : vector<64x256xf32>
    %55 = tpu.matmul %2, %54, %cst_32 {dimension_numbers = #tpu.dot_dimension_numbers<[1], [0], [0], [1], [0, 0, 1, 1], [], []>} : vector<64x32xf32>, vector<32x256xf32>, vector<64x256xf32> -> vector<64x256xf32>
    %56 = arith.addf %55, %7 : vector<64x256xf32>
    %57 = math.tanh %56 : vector<64x256xf32>
    %58 = vector.broadcast %3 : vector<64x1xf32> to vector<64x256xf32>
    %59 = arith.mulf %57, %58 : vector<64x256xf32>
    %cst_33 = arith.constant dense<0.000000e+00> : vector<256xf32>
    %60 = vector.multi_reduction <add>, %59, %cst_33 [0] : vector<64x256xf32> to vector<256xf32>
    %61 = vector.shape_cast %60 : vector<256xf32> to vector<1x256xf32>
    %c6 = arith.constant 6 : index
    %c0_34 = arith.constant 0 : index
    %c0_35 = arith.constant 0 : index
    %62 = vector.load %arg2[%c6, %c0_34, %c0_35] : memref<8x32x256xf32, #tpu.memory_space<vmem>>, vector<1x32x256xf32>
    %63 = vector.shape_cast %62 : vector<1x32x256xf32> to vector<32x256xf32>
    %cst_36 = arith.constant dense<0.000000e+00> : vector<64x256xf32>
    %64 = tpu.matmul %2, %63, %cst_36 {dimension_numbers = #tpu.dot_dimension_numbers<[1], [0], [0], [1], [0, 0, 1, 1], [], []>} : vector<64x32xf32>, vector<32x256xf32>, vector<64x256xf32> -> vector<64x256xf32>
    %65 = arith.addf %64, %7 : vector<64x256xf32>
    %66 = math.tanh %65 : vector<64x256xf32>
    %67 = vector.broadcast %3 : vector<64x1xf32> to vector<64x256xf32>
    %68 = arith.mulf %66, %67 : vector<64x256xf32>
    %cst_37 = arith.constant dense<0.000000e+00> : vector<256xf32>
    %69 = vector.multi_reduction <add>, %68, %cst_37 [0] : vector<64x256xf32> to vector<256xf32>
    %70 = vector.shape_cast %69 : vector<256xf32> to vector<1x256xf32>
    %c7 = arith.constant 7 : index
    %c0_38 = arith.constant 0 : index
    %c0_39 = arith.constant 0 : index
    %71 = vector.load %arg2[%c7, %c0_38, %c0_39] : memref<8x32x256xf32, #tpu.memory_space<vmem>>, vector<1x32x256xf32>
    %72 = vector.shape_cast %71 : vector<1x32x256xf32> to vector<32x256xf32>
    %cst_40 = arith.constant dense<0.000000e+00> : vector<64x256xf32>
    %73 = tpu.matmul %2, %72, %cst_40 {dimension_numbers = #tpu.dot_dimension_numbers<[1], [0], [0], [1], [0, 0, 1, 1], [], []>} : vector<64x32xf32>, vector<32x256xf32>, vector<64x256xf32> -> vector<64x256xf32>
    %74 = arith.addf %73, %7 : vector<64x256xf32>
    %75 = math.tanh %74 : vector<64x256xf32>
    %76 = vector.broadcast %3 : vector<64x1xf32> to vector<64x256xf32>
    %77 = arith.mulf %75, %76 : vector<64x256xf32>
    %cst_41 = arith.constant dense<0.000000e+00> : vector<256xf32>
    %78 = vector.multi_reduction <add>, %77, %cst_41 [0] : vector<64x256xf32> to vector<256xf32>
    %79 = vector.shape_cast %78 : vector<256xf32> to vector<1x256xf32>
    %80 = tpu.concatenate %16, %25, %34, %43, %52, %61, %70, %79 in 0 : vector<1x256xf32>, vector<1x256xf32>, vector<1x256xf32>, vector<1x256xf32>, vector<1x256xf32>, vector<1x256xf32>, vector<1x256xf32>, vector<1x256xf32> -> vector<8x256xf32>
    %cst_42 = arith.constant dense<0xFF800000> : vector<256xf32>
    %81 = vector.multi_reduction <maximumf>, %80, %cst_42 [0] : vector<8x256xf32> to vector<256xf32>
    %82 = vector.shape_cast %81 : vector<256xf32> to vector<1x256xf32>
    %83 = vector.broadcast %82 : vector<1x256xf32> to vector<8x256xf32>
    %84 = arith.subf %80, %83 : vector<8x256xf32>
    %85 = math.exp %84 : vector<8x256xf32>
    %cst_43 = arith.constant dense<0.000000e+00> : vector<256xf32>
    %86 = vector.multi_reduction <add>, %85, %cst_43 [0] : vector<8x256xf32> to vector<256xf32>
    %87 = vector.shape_cast %86 : vector<256xf32> to vector<1x256xf32>
    %88 = tpu.reciprocal %87 : vector<1x256xf32> -> vector<1x256xf32>
    %89 = vector.broadcast %88 : vector<1x256xf32> to vector<8x256xf32>
    %90 = arith.mulf %85, %89 : vector<8x256xf32>
    %91 = vector.extract_strided_slice %90 {offsets = [0, 0], sizes = [1, 256], strides = [1, 1]} : vector<8x256xf32> to vector<1x256xf32>
    %c0_44 = arith.constant 0 : index
    %c0_45 = arith.constant 0 : index
    %c0_46 = arith.constant 0 : index
    %92 = vector.load %arg2[%c0_44, %c0_45, %c0_46] : memref<8x32x256xf32, #tpu.memory_space<vmem>>, vector<1x32x256xf32>
    %93 = vector.shape_cast %92 : vector<1x32x256xf32> to vector<32x256xf32>
    %94 = vector.broadcast %91 : vector<1x256xf32> to vector<32x256xf32>
    %95 = arith.mulf %94, %93 : vector<32x256xf32>
    %96 = vector.extract_strided_slice %90 {offsets = [1, 0], sizes = [1, 256], strides = [1, 1]} : vector<8x256xf32> to vector<1x256xf32>
    %c1_47 = arith.constant 1 : index
    %c0_48 = arith.constant 0 : index
    %c0_49 = arith.constant 0 : index
    %97 = vector.load %arg2[%c1_47, %c0_48, %c0_49] : memref<8x32x256xf32, #tpu.memory_space<vmem>>, vector<1x32x256xf32>
    %98 = vector.shape_cast %97 : vector<1x32x256xf32> to vector<32x256xf32>
    %99 = vector.broadcast %96 : vector<1x256xf32> to vector<32x256xf32>
    %100 = arith.mulf %99, %98 : vector<32x256xf32>
    %101 = arith.addf %95, %100 : vector<32x256xf32>
    %102 = vector.extract_strided_slice %90 {offsets = [2, 0], sizes = [1, 256], strides = [1, 1]} : vector<8x256xf32> to vector<1x256xf32>
    %c2_50 = arith.constant 2 : index
    %c0_51 = arith.constant 0 : index
    %c0_52 = arith.constant 0 : index
    %103 = vector.load %arg2[%c2_50, %c0_51, %c0_52] : memref<8x32x256xf32, #tpu.memory_space<vmem>>, vector<1x32x256xf32>
    %104 = vector.shape_cast %103 : vector<1x32x256xf32> to vector<32x256xf32>
    %105 = vector.broadcast %102 : vector<1x256xf32> to vector<32x256xf32>
    %106 = arith.mulf %105, %104 : vector<32x256xf32>
    %107 = arith.addf %101, %106 : vector<32x256xf32>
    %108 = vector.extract_strided_slice %90 {offsets = [3, 0], sizes = [1, 256], strides = [1, 1]} : vector<8x256xf32> to vector<1x256xf32>
    %c3_53 = arith.constant 3 : index
    %c0_54 = arith.constant 0 : index
    %c0_55 = arith.constant 0 : index
    %109 = vector.load %arg2[%c3_53, %c0_54, %c0_55] : memref<8x32x256xf32, #tpu.memory_space<vmem>>, vector<1x32x256xf32>
    %110 = vector.shape_cast %109 : vector<1x32x256xf32> to vector<32x256xf32>
    %111 = vector.broadcast %108 : vector<1x256xf32> to vector<32x256xf32>
    %112 = arith.mulf %111, %110 : vector<32x256xf32>
    %113 = arith.addf %107, %112 : vector<32x256xf32>
    %114 = vector.extract_strided_slice %90 {offsets = [4, 0], sizes = [1, 256], strides = [1, 1]} : vector<8x256xf32> to vector<1x256xf32>
    %c4_56 = arith.constant 4 : index
    %c0_57 = arith.constant 0 : index
    %c0_58 = arith.constant 0 : index
    %115 = vector.load %arg2[%c4_56, %c0_57, %c0_58] : memref<8x32x256xf32, #tpu.memory_space<vmem>>, vector<1x32x256xf32>
    %116 = vector.shape_cast %115 : vector<1x32x256xf32> to vector<32x256xf32>
    %117 = vector.broadcast %114 : vector<1x256xf32> to vector<32x256xf32>
    %118 = arith.mulf %117, %116 : vector<32x256xf32>
    %119 = arith.addf %113, %118 : vector<32x256xf32>
    %120 = vector.extract_strided_slice %90 {offsets = [5, 0], sizes = [1, 256], strides = [1, 1]} : vector<8x256xf32> to vector<1x256xf32>
    %c5_59 = arith.constant 5 : index
    %c0_60 = arith.constant 0 : index
    %c0_61 = arith.constant 0 : index
    %121 = vector.load %arg2[%c5_59, %c0_60, %c0_61] : memref<8x32x256xf32, #tpu.memory_space<vmem>>, vector<1x32x256xf32>
    %122 = vector.shape_cast %121 : vector<1x32x256xf32> to vector<32x256xf32>
    %123 = vector.broadcast %120 : vector<1x256xf32> to vector<32x256xf32>
    %124 = arith.mulf %123, %122 : vector<32x256xf32>
    %125 = arith.addf %119, %124 : vector<32x256xf32>
    %126 = vector.extract_strided_slice %90 {offsets = [6, 0], sizes = [1, 256], strides = [1, 1]} : vector<8x256xf32> to vector<1x256xf32>
    %c6_62 = arith.constant 6 : index
    %c0_63 = arith.constant 0 : index
    %c0_64 = arith.constant 0 : index
    %127 = vector.load %arg2[%c6_62, %c0_63, %c0_64] : memref<8x32x256xf32, #tpu.memory_space<vmem>>, vector<1x32x256xf32>
    %128 = vector.shape_cast %127 : vector<1x32x256xf32> to vector<32x256xf32>
    %129 = vector.broadcast %126 : vector<1x256xf32> to vector<32x256xf32>
    %130 = arith.mulf %129, %128 : vector<32x256xf32>
    %131 = arith.addf %125, %130 : vector<32x256xf32>
    %132 = vector.extract_strided_slice %90 {offsets = [7, 0], sizes = [1, 256], strides = [1, 1]} : vector<8x256xf32> to vector<1x256xf32>
    %c7_65 = arith.constant 7 : index
    %c0_66 = arith.constant 0 : index
    %c0_67 = arith.constant 0 : index
    %133 = vector.load %arg2[%c7_65, %c0_66, %c0_67] : memref<8x32x256xf32, #tpu.memory_space<vmem>>, vector<1x32x256xf32>
    %134 = vector.shape_cast %133 : vector<1x32x256xf32> to vector<32x256xf32>
    %135 = vector.broadcast %132 : vector<1x256xf32> to vector<32x256xf32>
    %136 = arith.mulf %135, %134 : vector<32x256xf32>
    %137 = arith.addf %131, %136 : vector<32x256xf32>
    %c0_68 = arith.constant 0 : index
    %c0_69 = arith.constant 0 : index
    %138 = vector.load %arg7[%c0_68, %c0_69] : memref<32x256xf32, #tpu.memory_space<vmem>>, vector<32x256xf32>
    tpu.vector_store %arg7[%c0_68, %c0_69], %137 {strides = array<i32>} : memref<32x256xf32, #tpu.memory_space<vmem>>, vector<32x256xf32>,
    %c0_70 = arith.constant 0 : index
    %c0_71 = arith.constant 0 : index
    %139 = vector.load %arg8[%c0_70, %c0_71] : memref<8x256xf32, #tpu.memory_space<vmem>>, vector<8x256xf32>
    tpu.vector_store %arg8[%c0_70, %c0_71], %90 {strides = array<i32>} : memref<8x256xf32, #tpu.memory_space<vmem>>, vector<8x256xf32>,
    return
  }
  func.func @transform_0(%arg0: i32) -> (i32, i32) {
    %c0_i32 = arith.constant 0 : i32
    %c0_i32_0 = arith.constant 0 : i32
    return %c0_i32, %arg0 : i32, i32
  }
  func.func @transform_1(%arg0: i32) -> (i32, i32, i32) {
    %c0_i32 = arith.constant 0 : i32
    %c0_i32_0 = arith.constant 0 : i32
    %c0_i32_1 = arith.constant 0 : i32
    return %c0_i32, %c0_i32_0, %arg0 : i32, i32, i32
  }
  func.func @transform_2(%arg0: i32) -> (i32, i32) {
    %c0_i32 = arith.constant 0 : i32
    %c0_i32_0 = arith.constant 0 : i32
    %c0_i32_1 = arith.constant 0 : i32
    return %c0_i32, %c0_i32_0 : i32, i32
  }
  func.func @transform_3(%arg0: i32) -> (i32, i32) {
    %c0_i32 = arith.constant 0 : i32
    %c0_i32_0 = arith.constant 0 : i32
    %c0_i32_1 = arith.constant 0 : i32
    return %c0_i32, %c0_i32_0 : i32, i32
  }
  func.func @transform_4(%arg0: i32) -> (i32, i32) {
    %c0_i32 = arith.constant 0 : i32
    %c0_i32_0 = arith.constant 0 : i32
    %c0_i32_1 = arith.constant 0 : i32
    return %c0_i32, %c0_i32_0 : i32, i32
  }
  func.func @transform_5(%arg0: i32) -> (i32, i32) {
    %c0_i32 = arith.constant 0 : i32
    %c0_i32_0 = arith.constant 0 : i32
    %c0_i32_1 = arith.constant 0 : i32
    return %c0_i32, %c0_i32_0 : i32, i32
  }
  func.func @transform_6(%arg0: i32) -> (i32, i32) {
    %c0_i32 = arith.constant 0 : i32
    %c0_i32_0 = arith.constant 0 : i32
    return %c0_i32, %arg0 : i32, i32
  }
  func.func @transform_7(%arg0: i32) -> (i32, i32) {
    %c0_i32 = arith.constant 0 : i32
    %c0_i32_0 = arith.constant 0 : i32
    return %c0_i32, %arg0 : i32, i32
  }
}

</mosaic_0001>

<bundles_post_ra>
// kernel: tpu_custom_call.1
= control target key start
LH: loop header
LB: loop body
LE: loop exit
PB: predicated region body
PF: predicated region fallthrough
CT: control target
= control target key end

     0   :  { %13 = vsyncpa [#allocation3], 0  ;;  %s3645_s0 = inlined_call_operand.vmem [shape: f32[32,256], index: 0, kind: input, shape index: {}]   ;;  %s3646_s1 = inlined_call_operand.hbm [shape: f32[8,32,256], index: 1, kind: input, shape index: {}]   ;;  %s3647_s2 = inlined_call_operand.vmem [shape: f32[64,32], index: 2, kind: input, shape index: {}]   ;;  %s3648_s3 = inlined_call_operand.vmem [shape: f32[64,32], index: 3, kind: input, shape index: {}]   ;;  %s3649_s4 = inlined_call_operand.vmem [shape: f32[64,1], index: 4, kind: input, shape index: {}]   ;;  %s3650_s5 = inlined_call_operand.vmem [shape: f32[64,1], index: 5, kind: input, shape index: {}]   ;;  %s3651_s6 = inlined_call_operand.hbm [shape: f32[32,256], index: 6, kind: output, shape index: {0}]   ;;  %s3652_s7 = inlined_call_operand.hbm [shape: f32[8,256], index: 7, kind: output, shape index: {1}]  }
   0x1   :  { %14 = vsyncpa [#allocation4], 0 }
   0x2   :  { %15 = vsyncpa [#allocation7], 0  ;;  %s2599_s24 = smov [#allocation2]   ;;  %s2527_s28 = scalar_lea.hbm %s3646_s1, 8192 }
   0x3   :  { %s23_s25 = sshll.u32 %s2599_s24, 4  ;;  %p2528_p0 = scmp.ne.s32.totalorder %s3646_s1, %s2527_s28  ;;  %s24_s25 = int_to_ptr.vmem [resolvable:$true] %s23_s25 }
   0x4   :  { %p2531_p1 = scmp.lt.u32.totalorder %s2527_s28, %s3646_s1 }
   0x6   :  { %p2533_p2 = pnand %p2531_p1, %p2528_p0 }
   0x8   :  { %2536 = shalt.err (!%p2533_p2)
}
   0x9   :  { %s2537_s10 = scalar_lea.vmem %s24_s25, 8192  ;;  %p2542_p4 = scmp.lt.s32.totalorder %s24_s25, %s24_s25 }
   0xa   :  { %p2538_p3 = scmp.ne.s32.totalorder %s24_s25, %s2537_s10  ;;  %p2543_p5 = scmp.lt.s32.totalorder %s2537_s10, %s2537_s10 }
   0xc   :  { %p2544_p6 = por %p2543_p5, %p2542_p4 }
   0xe   :  { %p2545_p7 = pnand %p2544_p6, %p2538_p3 }
  0x10   :  { %2548 = shalt.err (!%p2545_p7)
}
  0x11   :  { %s2600_s11 = smov 256   ;;  %s2601_s12 = smov 16  }
  0x12   :  { %29 = dma.hbm_to_vmem [thread:$0]  %s3646_s1, 8192, %s24_s25, [#allocation3], %s2600_s11, %s2600_s11, %s2601_s12  }
  0x13   :  { %2593 = dma.done.wait [#allocation3], 8192  }
  0x14   :  { %2594 = vsyncadd [#allocation3], 4294959104  ;;  %v2602_v0 = vmov 0.0   ;;  %v2603_v1 = vmov 0   ;;  %v42_v2 = vld [vmem:[%s3645_s0 + $0x8] sm:$0xff]  ;;  %v44_v3 = vld [vmem:[%s3645_s0 + $0x18] sm:$0xff] }
  0x15   :  { %210 = vmatprep.mubr.f32.mxu0 %v2602_v0  ;;  %234 = vmatprep.mubr.f32.mxu1 %v2602_v0  ;;  %v41_v4 = vld [vmem:[%s3645_s0] sm:$0xff]  ;;  %v2114_v5 = vpack.c.bf16 %v44_v3, %v42_v2  ;;  %v43_v6 = vld [vmem:[%s3645_s0 + $0x10] sm:$0xff]  ;;  %v46_v7 = vld [vmem:[%s3645_s0 + $0x28] sm:$0xff]  ;;  %vm121_vm0 = vcmask 261120   ;;  %vm1762_vm1 = vcmask 1040384   ;;  %vm1765_vm2 = vcmask 1041408  }
  0x16   :  { %2197 = vset.pattern.permute.xlu0 %v2603_v1  ;;  %2198 = vset.pattern.permute.xlu1 %v2603_v1  ;;  %v48_v8 = vld [vmem:[%s3645_s0 + $0x38] sm:$0xff]  ;;  %v2116_v9 = vpack.c.bf16 %v43_v6, %v41_v4  ;;  %v45_v11 = vld [vmem:[%s3645_s0 + $0x20] sm:$0xff]  ;;  %v47_v12 = vld [vmem:[%s3645_s0 + $0x30] sm:$0xff]  ;;  %vm1768_vm3 = vcmask 1042432   ;;  %vm1771_vm4 = vcmask 1043456   ;;  %vm1774_vm5 = vcmask 1044480  }
  0x17   :  { %v2118_v10 = vpack.c.bf16 %v48_v8, %v46_v7  ;;  %2115 = vmatprep.subr.bf16.mxu0 %v2114_v5  ;;  %2186 = vmatprep.subr.bf16.mxu1 %v2114_v5  ;;  %v260_v13 = vld [vmem:[#allocation2 + $0x8] sm:$0xff]  ;;  %v262_v14 = vld [vmem:[#allocation2 + $0x18] sm:$0xff]  ;;  %v2120_v15 = vpack.c.bf16 %v47_v12, %v45_v11  ;;  %v259_v16 = vld [vmem:[#allocation2] sm:$0xff]  ;;  %vm1777_vm6 = vcmask 1045504   ;;  %vm1780_vm7 = vcmask 1046528  }
  0x18   :  { %2117 = vmatpush1.bf16.msra.mxu0 %v2116_v9  ;;  %2188 = vmatpush1.bf16.msra.mxu1 %v2116_v9  ;;  %v261_v17 = vld [vmem:[#allocation2 + $0x10] sm:$0xff]  ;;  %v504_v18 = vld [vmem:[#allocation2 + $0x48] sm:$0xff]  ;;  %v2122_v19 = vpack.c.bf16 %v262_v14, %v260_v13  ;;  %v506_v20 = vld [vmem:[#allocation2 + $0x58] sm:$0xff] }
  0x19   :  { %2119 = vmatprep.subr.bf16.mxu0 %v2118_v10  ;;  %2187 = vmatprep.subr.bf16.mxu1 %v2118_v10  ;;  %v503_v21 = vld [vmem:[#allocation2 + $0x40] sm:$0xff]  ;;  %v505_v22 = vld [vmem:[#allocation2 + $0x50] sm:$0xff]  ;;  %v2130_v23 = vpack.c.bf16 %v506_v20, %v504_v18  ;;  %v264_v24 = vld [vmem:[#allocation2 + $0x28] sm:$0xff]  ;;  %v2124_v28 = vpack.c.bf16 %v261_v17, %v259_v16 }
  0x1a   :  { %v266_v25 = vld [vmem:[#allocation2 + $0x38] sm:$0xff]  ;;  %v49_v26 = vld [vmem:[%s3647_s2] sm:$0xff]  ;;  %v2132_v29 = vpack.c.bf16 %v505_v22, %v503_v21  ;;  %v508_v30 = vld [vmem:[#allocation2 + $0x68] sm:$0xff] }
  0x1b   :  { %v53_v27 = vld [vmem:[%s3647_s2 + $0x20] sm:$0xff]  ;;  %v510_v32 = vld [vmem:[#allocation2 + $0x78] sm:$0xff]  ;;  %v2126_v33 = vpack.c.bf16 %v266_v25, %v264_v24  ;;  %v265_v34 = vld [vmem:[#allocation2 + $0x30] sm:$0xff] }
  0x1c   :  { %2121 = vmatpush1.bf16.msra.mxu0 %v2120_v15  ;;  %2189 = vmatpush1.bf16.msra.mxu1 %v2120_v15  ;;  %v263_v31 = vld [vmem:[#allocation2 + $0x20] sm:$0xff]  ;;  %v2134_v35 = vpack.c.bf16 %v510_v32, %v508_v30  ;;  %v509_v37 = vld [vmem:[#allocation2 + $0x70] sm:$0xff]  ;;  %v50_v38 = vld [vmem:[%s3647_s2 + $0x8] sm:$0xff] }
  0x1d   :  { %2123 = vmatprep.subr.bf16.mxu1 %v2122_v19  ;;  %2131 = vmatprep.subr.bf16.mxu0 %v2130_v23  ;;  %v507_v36 = vld [vmem:[#allocation2 + $0x60] sm:$0xff]  ;;  %v684_v39 = vld [vmem:[#allocation2 + $0x88] sm:$0xff]  ;;  %v686_v40 = vld [vmem:[#allocation2 + $0x98] sm:$0xff]  ;;  %v2128_v44 = vpack.c.bf16 %v265_v34, %v263_v31 }
  0x1e   :  { %v54_v41 = vld [vmem:[%s3647_s2 + $0x28] sm:$0xff]  ;;  %v866_v43 = vld [vmem:[#allocation2 + $0xd8] sm:$0xff]  ;;  %v2136_v45 = vpack.c.bf16 %v509_v37, %v507_v36  ;;  %v2138_v46 = vpack.c.bf16 %v686_v40, %v684_v39  ;;  %v51_v48 = vld [vmem:[%s3647_s2 + $0x10] sm:$0xff] }
  0x1f   :  { %2042 = vmatmul.mubr.msk.f32.vlgmr.msra.gmra.mrb[0].mxu0 %vm121_vm0, %v49_v26  ;;  %2046 = vmatmul.mubr.msk.f32.vlgmr.msra.gmra.mrb[0].mxu1 %vm121_vm0, %v53_v27  ;;  %v864_v42 = vld [vmem:[#allocation2 + $0xc8] sm:$0xff]  ;;  %v55_v49 = vld [vmem:[%s3647_s2 + $0x30] sm:$0xff]  ;;  %v52_v50 = vld [vmem:[%s3647_s2 + $0x18] sm:$0xff] }
  0x20   :  { %2125 = vmatpush1.bf16.msra.mxu1 %v2124_v28  ;;  %2133 = vmatpush1.bf16.msra.mxu0 %v2132_v29  ;;  %v2146_v47 = vpack.c.bf16 %v866_v43, %v864_v42  ;;  %v56_v51 = vld [vmem:[%s3647_s2 + $0x38] sm:$0xff]  ;;  %v683_v52 = vld [vmem:[#allocation2 + $0x80] sm:$0xff]  ;;  %v685_v53 = vld [vmem:[#allocation2 + $0x90] sm:$0xff] }
  0x21   :  { %216 = vmatprep.mubr.f32.mxu0 %v2602_v0  ;;  %240 = vmatprep.mubr.f32.mxu1 %v2602_v0  ;;  %v863_v54 = vld [vmem:[#allocation2 + $0xc0] sm:$0xff]  ;;  %v865_v55 = vld [vmem:[#allocation2 + $0xd0] sm:$0xff]  ;;  %v688_v56 = vld [vmem:[#allocation2 + $0xa8] sm:$0xff]  ;;  %v2140_v61 = vpack.c.bf16 %v685_v53, %v683_v52 }
  0x22   :  { %2127 = vmatprep.subr.bf16.mxu1 %v2126_v33  ;;  %2135 = vmatprep.subr.bf16.mxu0 %v2134_v35  ;;  %v690_v57 = vld [vmem:[#allocation2 + $0xb8] sm:$0xff]  ;;  %v868_v58 = vld [vmem:[#allocation2 + $0xe8] sm:$0xff]  ;;  %v2730_v60 = vld [vmem:[%s3648_s3] sm:$0xff]  ;;  %v2148_v62 = vpack.c.bf16 %v865_v55, %v863_v54 }
  0x23   :  { %2043 = vmatmul.mubr.msk.f32.gmra.mrb[2].mxu0 %vm121_vm0, %v50_v38  ;;  %2047 = vmatmul.mubr.msk.f32.gmra.mrb[2].mxu1 %vm121_vm0, %v54_v41  ;;  %v870_v59 = vld [vmem:[#allocation2 + $0xf8] sm:$0xff]  ;;  %v73_v63 = vld [vmem:[%s3649_s4] sm:$0xff]  ;;  %v689_v2 = vld [vmem:[#allocation2 + $0xb0] sm:$0xff]  ;;  %v2142_v4 = vpack.c.bf16 %v690_v57, %v688_v56 }
  0x24   :  { %222 = vmatprep.mubr.f32.mxu0 %v2602_v0  ;;  %246 = vmatprep.mubr.f32.mxu1 %v2602_v0  ;;  %v687_v1 = vld [vmem:[#allocation2 + $0xa0] sm:$0xff]  ;;  %v75_v3 = vld [vmem:[%s3649_s4 + $0x10] sm:$0xff]  ;;  %v2150_v5 = vpack.c.bf16 %v870_v59, %v868_v58  ;;  %v1044_v8 = vld [vmem:[#allocation2 + $0x108] sm:$0xff] }
  0x25   :  { %2129 = vmatpush1.bf16.msra.mxu1 %v2128_v44  ;;  %2137 = vmatpush1.bf16.msra.mxu0 %v2136_v45  ;;  %v867_v6 = vld [vmem:[#allocation2 + $0xe0] sm:$0xff]  ;;  %v869_v7 = vld [vmem:[#allocation2 + $0xf0] sm:$0xff]  ;;  %v1046_v9 = vld [vmem:[#allocation2 + $0x118] sm:$0xff]  ;;  %v2144_v13 = vpack.c.bf16 %v689_v2, %v687_v1 }
  0x26   :  { %2139 = vmatprep.subr.bf16.mxu1 %v2138_v46  ;;  %2147 = vmatprep.subr.bf16.mxu0 %v2146_v47  ;;  %v1224_v10 = vld [vmem:[#allocation2 + $0x148] sm:$0xff]  ;;  %v1226_v11 = vld [vmem:[#allocation2 + $0x158] sm:$0xff]  ;;  %v2152_v14 = vpack.c.bf16 %v869_v7, %v867_v6  ;;  %v2154_v15 = vpack.c.bf16 %v1046_v9, %v1044_v8  ;;  %v2758_v17 = vld [vmem:[%s3648_s3 + $0x10] sm:$0xff] }
  0x27   :  { %2044 = vmatmul.mubr.msk.f32.gmra.mrb[4].mxu0 %vm121_vm0, %v51_v48  ;;  %2048 = vmatmul.mubr.msk.f32.gmra.mrb[4].mxu1 %vm121_vm0, %v55_v49  ;;  %v2745_v12 = vld [vmem:[%s3648_s3 + $0x8] sm:$0xff]  ;;  %v2162_v16 = vpack.c.bf16 %v1226_v11, %v1224_v10  ;;  %v76_v19 = vld [vmem:[%s3649_s4 + $0x18] sm:$0xff]  ;;  %v77_v21 = vld [vmem:[%s3649_s4 + $0x20] sm:$0xff] }
  0x28   :  { %228 = vmatprep.mubr.f32.mxu0 %v2602_v0  ;;  %252 = vmatprep.mubr.f32.mxu1 %v2602_v0  ;;  %v74_v18 = vld [vmem:[%s3649_s4 + $0x8] sm:$0xff]  ;;  %v2775_v20 = vld [vmem:[%s3648_s3 + $0x18] sm:$0xff]  ;;  %v2792_v23 = vld [vmem:[%s3648_s3 + $0x20] sm:$0xff] }
  0x29   :  { %83 = vperm.xlu0 %2197, %v73_v63   ;;  %93 = vperm.xlu1 %2198, %v75_v3   ;;  %v78_v22 = vld [vmem:[%s3649_s4 + $0x28] sm:$0xff]  ;;  %v79_v24 = vld [vmem:[%s3649_s4 + $0x30] sm:$0xff]  ;;  %v80_v25 = vld [vmem:[%s3649_s4 + $0x38] sm:$0xff] }
  0x2a   :  { %v2809_v26 = vld [vmem:[%s3648_s3 + $0x28] sm:$0xff]  ;;  %v65_v27 = vld [vmem:[%s3650_s5] sm:$0xff]  ;;  %v2826_v29 = vld [vmem:[%s3648_s3 + $0x30] sm:$0xff] }
  0x2b   :  { %2045 = vmatmul.mubr.msk.f32.gmra.mrb[6].mxu0 %vm121_vm0, %v52_v50  ;;  %2049 = vmatmul.mubr.msk.f32.gmra.mrb[6].mxu1 %vm121_vm0, %v56_v51  ;;  %v66_v28 = vld [vmem:[%s3650_s5 + $0x8] sm:$0xff]  ;;  %v67_v30 = vld [vmem:[%s3650_s5 + $0x10] sm:$0xff]  ;;  %v68_v31 = vld [vmem:[%s3650_s5 + $0x18] sm:$0xff] }
  0x2c   :  { %355 = vmatprep.mubr.f32.mxu1 %v2602_v0  ;;  %575 = vmatprep.mubr.f32.mxu0 %v2602_v0  ;;  %v2843_v32 = vld [vmem:[%s3648_s3 + $0x38] sm:$0xff]  ;;  %v1043_v33 = vld [vmem:[#allocation2 + $0x100] sm:$0xff]  ;;  %v1045_v34 = vld [vmem:[#allocation2 + $0x110] sm:$0xff] }
  0x2d   :  { %88 = vperm.xlu0 %2197, %v74_v18   ;;  %98 = vperm.xlu1 %2198, %v76_v19   ;;  %v1223_v35 = vld [vmem:[#allocation2 + $0x140] sm:$0xff]  ;;  %v1225_v36 = vld [vmem:[#allocation2 + $0x150] sm:$0xff]  ;;  %v1048_v37 = vld [vmem:[#allocation2 + $0x128] sm:$0xff]  ;;  %v2156_v43 = vpack.c.bf16 %v1045_v34, %v1043_v33 }
  0x2e   :  { %v69_v38 = vld [vmem:[%s3650_s5 + $0x20] sm:$0xff]  ;;  %v70_v39 = vld [vmem:[%s3650_s5 + $0x28] sm:$0xff]  ;;  %v1050_v40 = vld [vmem:[#allocation2 + $0x138] sm:$0xff]  ;;  %v2164_v44 = vpack.c.bf16 %v1225_v36, %v1223_v35 }
  0x2f   :  { %2050 = vmatmul.mubr.msk.f32.vlgmr.msra.gmra.mrb[8].mxu1 %vm121_vm0, %v2730_v60  ;;  %2058 = vmatmul.mubr.msk.f32.vlgmr.msra.gmra.mrb[8].mxu0 %vm121_vm0, %v2730_v60  ;;  %v1228_v41 = vld [vmem:[#allocation2 + $0x168] sm:$0xff]  ;;  %v1230_v42 = vld [vmem:[#allocation2 + $0x178] sm:$0xff]  ;;  %v1047_v45 = vld [vmem:[#allocation2 + $0x120] sm:$0xff]  ;;  %v2158_v47 = vpack.c.bf16 %v1050_v40, %v1048_v37 }
  0x30   :  { %2141 = vmatpush1.bf16.msra.mxu1 %v2140_v61  ;;  %2149 = vmatpush1.bf16.msra.mxu0 %v2148_v62  ;;  %v1049_v46 = vld [vmem:[#allocation2 + $0x130] sm:$0xff]  ;;  %v2166_v48 = vpack.c.bf16 %v1230_v42, %v1228_v41  ;;  %v1227_v49 = vld [vmem:[#allocation2 + $0x160] sm:$0xff]  ;;  %v1404_v51 = vld [vmem:[#allocation2 + $0x188] sm:$0xff] }
  0x31   :  { %361 = vmatprep.mubr.f32.mxu1 %v2602_v0  ;;  %581 = vmatprep.mubr.f32.mxu0 %v2602_v0  ;;  %v1229_v50 = vld [vmem:[#allocation2 + $0x170] sm:$0xff]  ;;  %v1406_v52 = vld [vmem:[#allocation2 + $0x198] sm:$0xff]  ;;  %v1584_v53 = vld [vmem:[#allocation2 + $0x1c8] sm:$0xff]  ;;  %v2160_v55 = vpack.c.bf16 %v1049_v46, %v1047_v45 }
  0x32   :  { %2143 = vmatprep.subr.bf16.mxu1 %v2142_v4  ;;  %2151 = vmatprep.subr.bf16.mxu0 %v2150_v5  ;;  %v1586_v54 = vld [vmem:[#allocation2 + $0x1d8] sm:$0xff]  ;;  %v2168_v56 = vpack.c.bf16 %v1229_v50, %v1227_v49  ;;  %v2170_v57 = vpack.c.bf16 %v1406_v52, %v1404_v51  ;;  %v71_v59 = vld [vmem:[%s3650_s5 + $0x30] sm:$0xff]  ;;  %v1403_v62 = vld [vmem:[#allocation2 + $0x180] sm:$0xff] }
  0x33   :  { %2051 = vmatmul.mubr.msk.f32.gmra.mrb[10].mxu1 %vm121_vm0, %v2745_v12  ;;  %2059 = vmatmul.mubr.msk.f32.gmra.mrb[10].mxu0 %vm121_vm0, %v2745_v12  ;;  %v2178_v58 = vpack.c.bf16 %v1586_v54, %v1584_v53  ;;  %v72_v61 = vld [vmem:[%s3650_s5 + $0x38] sm:$0xff]  ;;  %v1405_v63 = vld [vmem:[#allocation2 + $0x190] sm:$0xff]  ;;  %v1583_v1 = vld [vmem:[#allocation2 + $0x1c0] sm:$0xff]  ;;  %s2604_s5 = smov [#allocation6]  }
  0x34   :  { %367 = vmatprep.mubr.f32.mxu1 %v2602_v0  ;;  %587 = vmatprep.mubr.f32.mxu0 %v2602_v0  ;;  %v1585_v2 = vld [vmem:[#allocation2 + $0x1d0] sm:$0xff]  ;;  %v1408_v3 = vld [vmem:[#allocation2 + $0x1a8] sm:$0xff]  ;;  %v1410_v4 = vld [vmem:[#allocation2 + $0x1b8] sm:$0xff]  ;;  %v2172_v7 = vpack.c.bf16 %v1405_v63, %v1403_v62  ;;  %s2029_s21 = sshll.u32 %s2604_s5, 4  ;;  %s3540_s21 = int_to_ptr.vmem [resolvable:$true] %s2029_s21 }
  0x35   :  { %2145 = vmatpush1.bf16.msra.mxu1 %v2144_v13  ;;  %2153 = vmatpush1.bf16.msra.mxu0 %v2152_v14  ;;  %v1588_v5 = vld [vmem:[#allocation2 + $0x1e8] sm:$0xff]  ;;  %v1590_v6 = vld [vmem:[#allocation2 + $0x1f8] sm:$0xff]  ;;  %v2180_v8 = vpack.c.bf16 %v1585_v2, %v1583_v1  ;;  %v1407_v9 = vld [vmem:[#allocation2 + $0x1a0] sm:$0xff]  ;;  %v2174_v10 = vpack.c.bf16 %v1410_v4, %v1408_v3  ;;  %s2549_s22 = scalar_lea.vmem %s3540_s21, 256  ;;  %p2554_p9 = scmp.lt.s32.totalorder %s3540_s21, %s3540_s21 }
  0x36   :  { %2155 = vmatprep.subr.bf16.mxu1 %v2154_v15  ;;  %2163 = vmatprep.subr.bf16.mxu0 %v2162_v16  ;;  %v1409_v11 = vld [vmem:[#allocation2 + $0x1b0] sm:$0xff]  ;;  %v2182_v13 = vpack.c.bf16 %v1590_v6, %v1588_v5  ;;  %v1587_v14 = vld [vmem:[#allocation2 + $0x1e0] sm:$0xff]  ;;  %p2550_p8 = scmp.ne.s32.totalorder %s3540_s21, %s2549_s22  ;;  %p2555_p10 = scmp.lt.s32.totalorder %s2549_s22, %s2549_s22 }
  0x37   :  { %2052 = vmatmul.mubr.msk.f32.gmra.mrb[12].mxu1 %vm121_vm0, %v2758_v17  ;;  %2060 = vmatmul.mubr.msk.f32.gmra.mrb[12].mxu0 %vm121_vm0, %v2758_v17  ;;  %v1589_v15 = vld [vmem:[#allocation2 + $0x1f0] sm:$0xff]  ;;  %v2176_v16 = vpack.c.bf16 %v1409_v11, %v1407_v9 }
  0x38   :  { %373 = vmatprep.mubr.f32.mxu1 %v2602_v0  ;;  %593 = vmatprep.mubr.f32.mxu0 %v2602_v0  ;;  %v2184_v18 = vpack.c.bf16 %v1589_v15, %v1587_v14  ;;  %p2556_p11 = por %p2555_p10, %p2554_p9 }
  0x39   :  { %103 = vperm.xlu0 %2197, %v77_v21   ;;  %108 = vperm.xlu1 %2198, %v78_v22  }
  0x3a   :  { %p2557_p12 = pnand %p2556_p11, %p2550_p8 }
  0x3b   :  { %2053 = vmatmul.mubr.msk.f32.gmra.mrb[14].mxu1 %vm121_vm0, %v2775_v20  ;;  %2061 = vmatmul.mubr.msk.f32.gmra.mrb[14].mxu0 %vm121_vm0, %v2775_v20 }
  0x3c   :  { %379 = vmatprep.mubr.f32.mxu1 %v2602_v0  ;;  %599 = vmatprep.mubr.f32.mxu0 %v2602_v0 }
  0x3d   :  { %113 = vperm.xlu0 %2197, %v79_v24   ;;  %118 = vperm.xlu1 %2198, %v80_v25  }
  0x3f   :  { %2054 = vmatmul.mubr.msk.f32.gmra.mrb[16].mxu1 %vm121_vm0, %v2792_v23  ;;  %2062 = vmatmul.mubr.msk.f32.gmra.mrb[16].mxu0 %vm121_vm0, %v2792_v23 }
  0x40   :  { %385 = vmatprep.mubr.f32.mxu1 %v2602_v0  ;;  %605 = vmatprep.mubr.f32.mxu0 %v2602_v0 }
  0x41   :  { %422 = vperm.xlu0 %2197, %v65_v27   ;;  %427 = vperm.xlu1 %2198, %v66_v28  }
  0x43   :  { %2055 = vmatmul.mubr.msk.f32.gmra.mrb[18].mxu1 %vm121_vm0, %v2809_v26  ;;  %2063 = vmatmul.mubr.msk.f32.gmra.mrb[18].mxu0 %vm121_vm0, %v2809_v26 }
  0x44   :  { %391 = vmatprep.mubr.f32.mxu1 %v2602_v0  ;;  %611 = vmatprep.mubr.f32.mxu0 %v2602_v0 }
  0x45   :  { %432 = vperm.xlu0 %2197, %v67_v30   ;;  %437 = vperm.xlu1 %2198, %v68_v31  }
  0x47   :  { %2056 = vmatmul.mubr.msk.f32.gmra.mrb[20].mxu1 %vm121_vm0, %v2826_v29  ;;  %2064 = vmatmul.mubr.msk.f32.gmra.mrb[20].mxu0 %vm121_vm0, %v2826_v29 }
  0x48   :  { %397 = vmatprep.mubr.f32.mxu1 %v2602_v0  ;;  %617 = vmatprep.mubr.f32.mxu0 %v2602_v0 }
  0x49   :  { %442 = vperm.xlu0 %2197, %v69_v38   ;;  %447 = vperm.xlu1 %2198, %v70_v39  }
  0x4b   :  { %2057 = vmatmul.mubr.msk.f32.gmra.mrb[22].mxu1 %vm121_vm0, %v2843_v32  ;;  %2065 = vmatmul.mubr.msk.f32.gmra.mrb[22].mxu0 %vm121_vm0, %v2843_v32 }
  0x4c   :  { %755 = vmatprep.mubr.f32.mxu1 %v2602_v0  ;;  %935 = vmatprep.mubr.f32.mxu0 %v2602_v0 }
  0x4d   :  { %452 = vperm.xlu0 %2197, %v71_v59   ;;  %457 = vperm.xlu1 %2198, %v72_v61  }
  0x4f   :  { %2066 = vmatmul.mubr.msk.f32.vlgmr.msra.gmra.mrb[24].mxu1 %vm121_vm0, %v2730_v60  ;;  %2074 = vmatmul.mubr.msk.f32.vlgmr.msra.gmra.mrb[24].mxu0 %vm121_vm0, %v2730_v60 }
  0x50   :  { %2157 = vmatpush1.bf16.msra.mxu1 %v2156_v43  ;;  %2165 = vmatpush1.bf16.msra.mxu0 %v2164_v44 }
  0x51   :  { %761 = vmatprep.mubr.f32.mxu1 %v2602_v0  ;;  %941 = vmatprep.mubr.f32.mxu0 %v2602_v0 }
  0x52   :  { %2159 = vmatprep.subr.bf16.mxu1 %v2158_v47  ;;  %2167 = vmatprep.subr.bf16.mxu0 %v2166_v48 }
  0x53   :  { %2067 = vmatmul.mubr.msk.f32.gmra.mrb[26].mxu1 %vm121_vm0, %v2745_v12  ;;  %2075 = vmatmul.mubr.msk.f32.gmra.mrb[26].mxu0 %vm121_vm0, %v2745_v12 }
  0x54   :  { %767 = vmatprep.mubr.f32.mxu1 %v2602_v0  ;;  %947 = vmatprep.mubr.f32.mxu0 %v2602_v0 }
  0x55   :  { %2161 = vmatpush1.bf16.msra.mxu1 %v2160_v55  ;;  %2169 = vmatpush1.bf16.msra.mxu0 %v2168_v56 }
  0x56   :  { %2171 = vmatprep.subr.bf16.mxu1 %v2170_v57  ;;  %2179 = vmatprep.subr.bf16.mxu0 %v2178_v58 }
  0x57   :  { %2068 = vmatmul.mubr.msk.f32.gmra.mrb[28].mxu1 %vm121_vm0, %v2758_v17  ;;  %2076 = vmatmul.mubr.msk.f32.gmra.mrb[28].mxu0 %vm121_vm0, %v2758_v17 }
  0x58   :  { %773 = vmatprep.mubr.f32.mxu1 %v2602_v0  ;;  %953 = vmatprep.mubr.f32.mxu0 %v2602_v0 }
  0x5b   :  { %2069 = vmatmul.mubr.msk.f32.gmra.mrb[30].mxu1 %vm121_vm0, %v2775_v20  ;;  %2077 = vmatmul.mubr.msk.f32.gmra.mrb[30].mxu0 %vm121_vm0, %v2775_v20 }
  0x5c   :  { %779 = vmatprep.mubr.f32.mxu1 %v2602_v0  ;;  %959 = vmatprep.mubr.f32.mxu0 %v2602_v0 }
  0x5f   :  { %2070 = vmatmul.mubr.msk.f32.gmra.mrb[32].mxu1 %vm121_vm0, %v2792_v23  ;;  %2078 = vmatmul.mubr.msk.f32.gmra.mrb[32].mxu0 %vm121_vm0, %v2792_v23 }
  0x60   :  { %785 = vmatprep.mubr.f32.mxu1 %v2602_v0  ;;  %965 = vmatprep.mubr.f32.mxu0 %v2602_v0 }
  0x63   :  { %2071 = vmatmul.mubr.msk.f32.gmra.mrb[34].mxu1 %vm121_vm0, %v2809_v26  ;;  %2079 = vmatmul.mubr.msk.f32.gmra.mrb[34].mxu0 %vm121_vm0, %v2809_v26 }
  0x64   :  { %791 = vmatprep.mubr.f32.mxu1 %v2602_v0  ;;  %971 = vmatprep.mubr.f32.mxu0 %v2602_v0 }
  0x67   :  { %2072 = vmatmul.mubr.msk.f32.gmra.mrb[36].mxu1 %vm121_vm0, %v2826_v29  ;;  %2080 = vmatmul.mubr.msk.f32.gmra.mrb[36].mxu0 %vm121_vm0, %v2826_v29 }
  0x68   :  { %797 = vmatprep.mubr.f32.mxu1 %v2602_v0  ;;  %977 = vmatprep.mubr.f32.mxu0 %v2602_v0 }
  0x6b   :  { %2073 = vmatmul.mubr.msk.f32.gmra.mrb[38].mxu1 %vm121_vm0, %v2843_v32  ;;  %2081 = vmatmul.mubr.msk.f32.gmra.mrb[38].mxu0 %vm121_vm0, %v2843_v32 }
  0x6c   :  { %1115 = vmatprep.mubr.f32.mxu1 %v2602_v0  ;;  %1295 = vmatprep.mubr.f32.mxu0 %v2602_v0 }
  0x6f   :  { %2082 = vmatmul.mubr.msk.f32.vlgmr.msra.gmra.mrb[40].mxu1 %vm121_vm0, %v2730_v60  ;;  %2090 = vmatmul.mubr.msk.f32.vlgmr.msra.gmra.mrb[40].mxu0 %vm121_vm0, %v2730_v60 }
  0x70   :  { %2173 = vmatpush1.bf16.msra.mxu1 %v2172_v7  ;;  %2181 = vmatpush1.bf16.msra.mxu0 %v2180_v8 }
  0x71   :  { %1121 = vmatprep.mubr.f32.mxu1 %v2602_v0  ;;  %1301 = vmatprep.mubr.f32.mxu0 %v2602_v0 }
  0x72   :  { %2175 = vmatprep.subr.bf16.mxu1 %v2174_v10  ;;  %2183 = vmatprep.subr.bf16.mxu0 %v2182_v13 }
  0x73   :  { %2083 = vmatmul.mubr.msk.f32.gmra.mrb[42].mxu1 %vm121_vm0, %v2745_v12  ;;  %2091 = vmatmul.mubr.msk.f32.gmra.mrb[42].mxu0 %vm121_vm0, %v2745_v12 }
  0x74   :  { %1127 = vmatprep.mubr.f32.mxu1 %v2602_v0  ;;  %1307 = vmatprep.mubr.f32.mxu0 %v2602_v0 }
  0x75   :  { %2177 = vmatpush1.bf16.msra.mxu1 %v2176_v16  ;;  %2185 = vmatpush1.bf16.msra.mxu0 %v2184_v18 }
  0x77   :  { %2084 = vmatmul.mubr.msk.f32.gmra.mrb[44].mxu1 %vm121_vm0, %v2758_v17  ;;  %2092 = vmatmul.mubr.msk.f32.gmra.mrb[44].mxu0 %vm121_vm0, %v2758_v17 }
  0x78   :  { %1133 = vmatprep.mubr.f32.mxu1 %v2602_v0  ;;  %1313 = vmatprep.mubr.f32.mxu0 %v2602_v0 }
  0x7b   :  { %2085 = vmatmul.mubr.msk.f32.gmra.mrb[46].mxu1 %vm121_vm0, %v2775_v20  ;;  %2093 = vmatmul.mubr.msk.f32.gmra.mrb[46].mxu0 %vm121_vm0, %v2775_v20 }
  0x7c   :  { %1139 = vmatprep.mubr.f32.mxu1 %v2602_v0  ;;  %1319 = vmatprep.mubr.f32.mxu0 %v2602_v0 }
  0x7f   :  { %2086 = vmatmul.mubr.msk.f32.gmra.mrb[48].mxu1 %vm121_vm0, %v2792_v23  ;;  %2094 = vmatmul.mubr.msk.f32.gmra.mrb[48].mxu0 %vm121_vm0, %v2792_v23 }
  0x80   :  { %1145 = vmatprep.mubr.f32.mxu1 %v2602_v0  ;;  %1325 = vmatprep.mubr.f32.mxu0 %v2602_v0 }
  0x83   :  { %2087 = vmatmul.mubr.msk.f32.gmra.mrb[50].mxu1 %vm121_vm0, %v2809_v26  ;;  %2095 = vmatmul.mubr.msk.f32.gmra.mrb[50].mxu0 %vm121_vm0, %v2809_v26 }
  0x84   :  { %1151 = vmatprep.mubr.f32.mxu1 %v2602_v0  ;;  %1331 = vmatprep.mubr.f32.mxu0 %v2602_v0 }
  0x87   :  { %2088 = vmatmul.mubr.msk.f32.gmra.mrb[52].mxu1 %vm121_vm0, %v2826_v29  ;;  %2096 = vmatmul.mubr.msk.f32.gmra.mrb[52].mxu0 %vm121_vm0, %v2826_v29 }
  0x88   :  { %1157 = vmatprep.mubr.f32.mxu1 %v2602_v0  ;;  %1337 = vmatprep.mubr.f32.mxu0 %v2602_v0 }
  0x8b   :  { %2089 = vmatmul.mubr.msk.f32.gmra.mrb[54].mxu1 %vm121_vm0, %v2843_v32  ;;  %2097 = vmatmul.mubr.msk.f32.gmra.mrb[54].mxu0 %vm121_vm0, %v2843_v32 }
  0x8c   :  { %1475 = vmatprep.mubr.f32.mxu1 %v2602_v0  ;;  %1655 = vmatprep.mubr.f32.mxu0 %v2602_v0 }
  0x8f   :  { %2098 = vmatmul.mubr.msk.f32.vlgmr.msra.gmra.mrb[56].mxu1 %vm121_vm0, %v2730_v60  ;;  %2106 = vmatmul.mubr.msk.f32.vlgmr.msra.gmra.mrb[56].mxu0 %vm121_vm0, %v2730_v60 }
  0x90   :  { %1481 = vmatprep.mubr.f32.mxu1 %v2602_v0  ;;  %1661 = vmatprep.mubr.f32.mxu0 %v2602_v0 }
  0x93   :  { %2099 = vmatmul.mubr.msk.f32.gmra.mrb[58].mxu1 %vm121_vm0, %v2745_v12  ;;  %2107 = vmatmul.mubr.msk.f32.gmra.mrb[58].mxu0 %vm121_vm0, %v2745_v12 }
  0x94   :  { %1487 = vmatprep.mubr.f32.mxu1 %v2602_v0  ;;  %1667 = vmatprep.mubr.f32.mxu0 %v2602_v0 }
  0x97   :  { %2100 = vmatmul.mubr.msk.f32.gmra.mrb[60].mxu1 %vm121_vm0, %v2758_v17  ;;  %2108 = vmatmul.mubr.msk.f32.gmra.mrb[60].mxu0 %vm121_vm0, %v2758_v17 }
  0x98   :  { %1493 = vmatprep.mubr.f32.mxu1 %v2602_v0  ;;  %1673 = vmatprep.mubr.f32.mxu0 %v2602_v0 }
  0x9b   :  { %2101 = vmatmul.mubr.msk.f32.gmra.mrb[62].mxu1 %vm121_vm0, %v2775_v20  ;;  %2109 = vmatmul.mubr.msk.f32.gmra.mrb[62].mxu0 %vm121_vm0, %v2775_v20 }
  0x9c   :  { %1499 = vmatprep.mubr.f32.mxu1 %v2602_v0  ;;  %1679 = vmatprep.mubr.f32.mxu0 %v2602_v0 }
  0x9f   :  { %2102 = vmatmul.mubr.msk.f32.gmra.mrb[64].mxu1 %vm121_vm0, %v2792_v23  ;;  %2110 = vmatmul.mubr.msk.f32.gmra.mrb[64].mxu0 %vm121_vm0, %v2792_v23 }
  0xa0   :  { %1505 = vmatprep.mubr.f32.mxu1 %v2602_v0  ;;  %1685 = vmatprep.mubr.f32.mxu0 %v2602_v0 }
  0xa3   :  { %2103 = vmatmul.mubr.msk.f32.gmra.mrb[66].mxu1 %vm121_vm0, %v2809_v26  ;;  %2111 = vmatmul.mubr.msk.f32.gmra.mrb[66].mxu0 %vm121_vm0, %v2809_v26 }
  0xa4   :  { %1511 = vmatprep.mubr.f32.mxu1 %v2602_v0  ;;  %1691 = vmatprep.mubr.f32.mxu0 %v2602_v0 }
  0xa7   :  { %2104 = vmatmul.mubr.msk.f32.gmra.mrb[68].mxu1 %vm121_vm0, %v2826_v29  ;;  %2112 = vmatmul.mubr.msk.f32.gmra.mrb[68].mxu0 %vm121_vm0, %v2826_v29 }
  0xa8   :  { %1517 = vmatprep.mubr.f32.mxu1 %v2602_v0  ;;  %1697 = vmatprep.mubr.f32.mxu0 %v2602_v0  ;;  %v84_v24 = vpop.permute.xlu0 %83  ;;  %v94_v0 = vpop.permute.xlu1 %93 }
  0xab   :  { %2105 = vmatmul.mubr.msk.f32.gmra.mrb[70].mxu1 %vm121_vm0, %v2843_v32  ;;  %2113 = vmatmul.mubr.msk.f32.gmra.mrb[70].mxu0 %vm121_vm0, %v2843_v32 }
  0xac   :  { %v89_v33 = vpop.permute.xlu0 %88  ;;  %v99_v34 = vpop.permute.xlu1 %98 }
  0xb8   :  { %v104_v53 = vpop.permute.xlu0 %103  ;;  %v109_v56 = vpop.permute.xlu1 %108 }
  0xbc   :  { %v114_v3 = vpop.permute.xlu0 %113  ;;  %v119_v6 = vpop.permute.xlu1 %118 }
  0xf2   :  { %v3005_v60 = vpop.f32.mrb[0].mxu1  ;;  %v212_v12 = vpop.f32.mrb[0].mxu0 }
  0xf3   :  { %v3007_v17 = vpop.f32.mrb[1].mxu1  ;;  %v214_v19 = vpop.f32.mrb[1].mxu0  ;;  %v3021_v35 = vadd.f32 %v212_v12, %v84_v24  ;;  %v3052_v12 = vadd.f32 %v3005_v60, %v104_v53 }
  0xf4   :  { %v3023_v36 = vadd.f32 %v214_v19, %v84_v24  ;;  %v3054_v19 = vpop.permute.xlu0 %422  ;;  %v3067_v60 = vpop.permute.xlu1 %427 }
  0xf5   :  { %3659 = vst [vmem:[#allocation11_spill] sm:$0xff] %v3054_v19  ;;  %3660 = vst [vmem:[#allocation12_spill] sm:$0xff] %v3067_v60 }
  0xf6   :  { %v3009_v20 = vpop.f32.mrb[2].mxu1  ;;  %v218_v21 = vpop.f32.mrb[2].mxu0 }
  0xf7   :  { %v3011_v22 = vpop.f32.mrb[3].mxu1  ;;  %v220_v23 = vpop.f32.mrb[3].mxu0  ;;  %v3029_v45 = vadd.f32 %v218_v21, %v89_v33 }
  0xf8   :  { %v3031_v46 = vadd.f32 %v220_v23, %v89_v33 }
  0xfa   :  { %v3013_v25 = vpop.f32.mrb[4].mxu1  ;;  %v224_v26 = vpop.f32.mrb[4].mxu0 }
  0xfb   :  { %v3015_v27 = vpop.f32.mrb[5].mxu1  ;;  %v226_v28 = vpop.f32.mrb[5].mxu0  ;;  %v3037_v57 = vadd.f32 %v224_v26, %v94_v0  ;;  %v3062_v26 = vadd.f32 %v3009_v20, %v109_v56 }
  0xfc   :  { %v3039_v58 = vadd.f32 %v226_v28, %v94_v0  ;;  %v3059_v0 = vadd.f32 %v3007_v17, %v104_v53  ;;  %v3065_v28 = vadd.f32 %v3011_v22, %v109_v56  ;;  %v3073_v33 = vadd.f32 %v3015_v27, %v114_v3 }
  0xfe   :  { %v3017_v29 = vpop.f32.mrb[6].mxu1  ;;  %v230_v30 = vpop.f32.mrb[6].mxu0 }
  0xff   :  { %v3019_v31 = vpop.f32.mrb[7].mxu1  ;;  %v232_v32 = vpop.f32.mrb[7].mxu0  ;;  %v3045_v7 = vadd.f32 %v230_v30, %v99_v34 }
 0x100   :  { %v3047_v8 = vadd.f32 %v232_v32, %v99_v34  ;;  %v3070_v32 = vadd.f32 %v3013_v25, %v114_v3  ;;  %v3076_v34 = vadd.f32 %v3017_v29, %v119_v6 }
 0x102   :  { %v357_v37 = vpop.f32.mrb[8].mxu1  ;;  %v577_v38 = vpop.f32.mrb[8].mxu0 }
 0x103   :  { %v358_v39 = vadd.f32 %v357_v37, %v3021_v35  ;;  %v578_v40 = vadd.f32 %v577_v38, %v3021_v35  ;;  %v359_v41 = vpop.f32.mrb[9].mxu1  ;;  %v579_v42 = vpop.f32.mrb[9].mxu0 }
 0x104   :  { %v360_v43 = vadd.f32 %v359_v41, %v3023_v36  ;;  %v580_v44 = vadd.f32 %v579_v42, %v3023_v36 }
 0x105   :  { %2199 = vtanh.f32 %v358_v39 }
 0x106   :  { %2201 = vtanh.f32 %v578_v40  ;;  %v363_v47 = vpop.f32.mrb[10].mxu1  ;;  %v583_v48 = vpop.f32.mrb[10].mxu0 }
 0x107   :  { %2203 = vtanh.f32 %v360_v43  ;;  %v364_v49 = vadd.f32 %v363_v47, %v3029_v45  ;;  %v584_v50 = vadd.f32 %v583_v48, %v3029_v45  ;;  %v365_v51 = vpop.f32.mrb[11].mxu1  ;;  %v585_v52 = vpop.f32.mrb[11].mxu0 }
 0x108   :  { %2205 = vtanh.f32 %v580_v44  ;;  %v366_v54 = vadd.f32 %v365_v51, %v3031_v46  ;;  %v586_v55 = vadd.f32 %v585_v52, %v3031_v46  ;;  %v3085_v44 = vadd.f32 %v3019_v31, %v119_v6  ;;  %v3087_v47 = vpop.permute.xlu0 %432  ;;  %v3098_v6 = vpop.permute.xlu1 %437 }
 0x109   :  { %2207 = vtanh.f32 %v364_v49 }
 0x10a   :  { %2209 = vtanh.f32 %v584_v50  ;;  %v369_v59 = vpop.f32.mrb[12].mxu1  ;;  %v589_v61 = vpop.f32.mrb[12].mxu0 }
 0x10b   :  { %2211 = vtanh.f32 %v366_v54  ;;  %v370_v62 = vadd.f32 %v369_v59, %v3037_v57  ;;  %v590_v63 = vadd.f32 %v589_v61, %v3037_v57  ;;  %v371_v1 = vpop.f32.mrb[13].mxu1  ;;  %v591_v2 = vpop.f32.mrb[13].mxu0 }
 0x10c   :  { %2213 = vtanh.f32 %v586_v55  ;;  %v372_v4 = vadd.f32 %v371_v1, %v3039_v58  ;;  %v592_v5 = vadd.f32 %v591_v2, %v3039_v58 }
 0x10d   :  { %2215 = vtanh.f32 %v370_v62 }
 0x10e   :  { %2217 = vtanh.f32 %v590_v63  ;;  %v375_v9 = vpop.f32.mrb[14].mxu1  ;;  %v595_v10 = vpop.f32.mrb[14].mxu0 }
 0x10f   :  { %v2200_v11 = vpop.eup %2199  ;;  %2219 = vtanh.f32 %v372_v4  ;;  %v376_v13 = vadd.f32 %v375_v9, %v3045_v7  ;;  %v596_v14 = vadd.f32 %v595_v10, %v3045_v7  ;;  %v377_v15 = vpop.f32.mrb[15].mxu1 }
 0x110   :  { %v597_v16 = vpop.f32.mrb[15].mxu0  ;;  %v2202_v18 = vpop.eup %2201  ;;  %2221 = vtanh.f32 %v592_v5  ;;  %v378_v21 = vadd.f32 %v377_v15, %v3047_v8  ;;  %v460_v25 = vmul.f32 %v2200_v11, %v3054_v19 }
 0x111   :  { %v598_v23 = vadd.f32 %v597_v16, %v3047_v8  ;;  %v2204_v24 = vpop.eup %2203  ;;  %2223 = vtanh.f32 %v376_v13  ;;  %v640_v48 = vmul.f32 %v2202_v18, %v3054_v19 }
 0x112   :  { %v2206_v30 = vpop.eup %2205  ;;  %2225 = vtanh.f32 %v596_v14  ;;  %v381_v17 = vpop.f32.mrb[16].mxu1  ;;  %v461_v54 = vmul.f32 %v2204_v24, %v3054_v19 }
 0x113   :  { %v601_v20 = vpop.f32.mrb[16].mxu0  ;;  %v2208_v37 = vpop.eup %2207  ;;  %2227 = vtanh.f32 %v378_v21  ;;  %v382_v22 = vadd.f32 %v381_v17, %v3052_v12  ;;  %v641_v11 = vmul.f32 %v2206_v30, %v3054_v19 }
 0x114   :  { %v602_v38 = vadd.f32 %v601_v20, %v3052_v12  ;;  %v383_v39 = vpop.f32.mrb[17].mxu1  ;;  %v603_v40 = vpop.f32.mrb[17].mxu0  ;;  %2229 = vtanh.f32 %v598_v23  ;;  %v462_v42 = vmul.f32 %v2208_v37, %v3067_v60 }
 0x115   :  { %v2210_v41 = vpop.eup %2209  ;;  %v384_v27 = vadd.f32 %v383_v39, %v3059_v0  ;;  %v604_v29 = vadd.f32 %v603_v40, %v3059_v0  ;;  %2231 = vtanh.f32 %v382_v22 }
 0x116   :  { %v2212_v43 = vpop.eup %2211  ;;  %v642_v49 = vmul.f32 %v2210_v41, %v3067_v60  ;;  %2233 = vtanh.f32 %v602_v38  ;;  %v387_v51 = vpop.f32.mrb[18].mxu1  ;;  %v476_v53 = vadd.f32 %v462_v42, %v460_v25 }
 0x117   :  { %v2214_v50 = vpop.eup %2213  ;;  %v607_v52 = vpop.f32.mrb[18].mxu0  ;;  %v463_v55 = vmul.f32 %v2212_v43, %v3067_v60  ;;  %2235 = vtanh.f32 %v384_v27  ;;  %v388_v31 = vadd.f32 %v387_v51, %v3062_v26 }
 0x118   :  { %v2216_v56 = vpop.eup %2215  ;;  %v608_v59 = vadd.f32 %v607_v52, %v3062_v26  ;;  %v389_v61 = vpop.f32.mrb[19].mxu1  ;;  %v656_v63 = vadd.f32 %v642_v49, %v640_v48  ;;  %2237 = vtanh.f32 %v604_v29  ;;  %v643_v21 = vmul.f32 %v2214_v50, %v3067_v60 }
 0x119   :  { %v609_v62 = vpop.f32.mrb[19].mxu0  ;;  %v2218_v1 = vpop.eup %2217  ;;  %v390_v2 = vadd.f32 %v389_v61, %v3065_v28  ;;  %v464_v4 = vmul.f32 %v2216_v56, %v3087_v47  ;;  %2239 = vtanh.f32 %v388_v31  ;;  %v489_v10 = vadd.f32 %v463_v55, %v461_v54 }
 0x11a   :  { %v610_v3 = vadd.f32 %v609_v62, %v3065_v28  ;;  %v2220_v5 = vpop.eup %2219  ;;  %v644_v9 = vmul.f32 %v2218_v1, %v3087_v47  ;;  %2241 = vtanh.f32 %v608_v59  ;;  %v393_v14 = vpop.f32.mrb[20].mxu1  ;;  %v669_v52 = vadd.f32 %v643_v21, %v641_v11 }
 0x11b   :  { %v2222_v13 = vpop.eup %2221  ;;  %v613_v15 = vpop.f32.mrb[20].mxu0  ;;  %v477_v16 = vadd.f32 %v476_v53, %v464_v4  ;;  %v465_v18 = vmul.f32 %v2220_v5, %v3087_v47  ;;  %2243 = vtanh.f32 %v390_v2  ;;  %v394_v24 = vadd.f32 %v393_v14, %v3070_v32 }
 0x11c   :  { %v2224_v23 = vpop.eup %2223  ;;  %v614_v17 = vadd.f32 %v613_v15, %v3070_v32  ;;  %v395_v20 = vpop.f32.mrb[21].mxu1  ;;  %v657_v22 = vadd.f32 %v656_v63, %v644_v9  ;;  %2245 = vtanh.f32 %v610_v3  ;;  %v645_v42 = vmul.f32 %v2222_v13, %v3087_v47 }
 0x11d   :  { %v615_v37 = vpop.f32.mrb[21].mxu0  ;;  %v2226_v38 = vpop.eup %2225  ;;  %v396_v30 = vadd.f32 %v395_v20, %v3073_v33  ;;  %v466_v40 = vmul.f32 %v2224_v23, %v3098_v6  ;;  %2247 = vtanh.f32 %v394_v24  ;;  %v490_v29 = vadd.f32 %v489_v10, %v465_v18 }
 0x11e   :  { %v616_v39 = vadd.f32 %v615_v37, %v3073_v33  ;;  %v2228_v25 = vpop.eup %2227  ;;  %v3109_v41 = vpop.permute.xlu0 %442  ;;  %v646_v27 = vmul.f32 %v2226_v38, %v3098_v6  ;;  %2249 = vtanh.f32 %v614_v17 }
 0x11f   :  { %v2230_v43 = vpop.eup %2229  ;;  %v399_v48 = vpop.f32.mrb[22].mxu1  ;;  %v478_v50 = vadd.f32 %v477_v16, %v466_v40  ;;  %v467_v51 = vmul.f32 %v2228_v25, %v3098_v6  ;;  %2251 = vtanh.f32 %v396_v30  ;;  %v670_v16 = vadd.f32 %v669_v52, %v645_v42 }
 0x120   :  { %v619_v49 = vpop.f32.mrb[22].mxu0  ;;  %v2232_v53 = vpop.eup %2231  ;;  %v400_v54 = vadd.f32 %v399_v48, %v3076_v34  ;;  %v658_v59 = vadd.f32 %v657_v22, %v646_v27  ;;  %2253 = vtanh.f32 %v616_v39  ;;  %v647_v9 = vmul.f32 %v2230_v43, %v3098_v6 }
 0x121   :  { %v620_v55 = vadd.f32 %v619_v49, %v3076_v34  ;;  %v401_v56 = vpop.f32.mrb[23].mxu1  ;;  %v621_v31 = vpop.f32.mrb[23].mxu0  ;;  %v468_v1 = vmul.f32 %v2232_v53, %v3109_v41  ;;  %v491_v5 = vadd.f32 %v490_v29, %v467_v51 }
 0x122   :  { %v2234_v61 = vpop.eup %2233  ;;  %v402_v62 = vadd.f32 %v401_v56, %v3085_v44  ;;  %v622_v63 = vadd.f32 %v621_v31, %v3085_v44  ;;  %2255 = vtanh.f32 %v400_v54  ;;  %v3119_v3 = vpop.permute.xlu1 %447  ;;  %v671_v51 = vadd.f32 %v670_v16, %v647_v9 }
 0x123   :  { %v2236_v2 = vpop.eup %2235  ;;  %v648_v4 = vmul.f32 %v2234_v61, %v3109_v41  ;;  %2257 = vtanh.f32 %v620_v55  ;;  %v757_v11 = vpop.f32.mrb[24].mxu1  ;;  %v479_v14 = vadd.f32 %v478_v50, %v468_v1 }
 0x124   :  { %v2238_v10 = vpop.eup %2237  ;;  %v937_v13 = vpop.f32.mrb[24].mxu0  ;;  %v469_v15 = vmul.f32 %v2236_v2, %v3109_v41  ;;  %2259 = vtanh.f32 %v402_v62  ;;  %v758_v21 = vadd.f32 %v757_v11, %v3021_v35 }
 0x125   :  { %v2240_v18 = vpop.eup %2239  ;;  %v938_v23 = vadd.f32 %v937_v13, %v3021_v35  ;;  %v759_v24 = vpop.f32.mrb[25].mxu1  ;;  %v659_v20 = vadd.f32 %v658_v59, %v648_v4  ;;  %2261 = vtanh.f32 %v622_v63  ;;  %v649_v29 = vmul.f32 %v2238_v10, %v3109_v41 }
 0x126   :  { %v939_v17 = vpop.f32.mrb[25].mxu0  ;;  %v2242_v37 = vpop.eup %2241  ;;  %v760_v22 = vadd.f32 %v759_v24, %v3023_v36  ;;  %v470_v30 = vmul.f32 %v2240_v18, %v3119_v3  ;;  %2263 = vtanh.f32 %v758_v21  ;;  %v492_v27 = vadd.f32 %v491_v5, %v469_v15 }
 0x127   :  { %v940_v38 = vadd.f32 %v939_v17, %v3023_v36  ;;  %v2244_v39 = vpop.eup %2243  ;;  %v3129_v40 = vpop.permute.xlu0 %452  ;;  %v650_v25 = vmul.f32 %v2242_v37, %v3119_v3  ;;  %2265 = vtanh.f32 %v938_v23  ;;  %v672_v16 = vadd.f32 %v671_v51, %v649_v29 }
 0x128   :  { %v2246_v42 = vpop.eup %2245  ;;  %v763_v43 = vpop.f32.mrb[26].mxu1  ;;  %v480_v49 = vadd.f32 %v479_v14, %v470_v30  ;;  %v471_v50 = vmul.f32 %v2244_v39, %v3119_v3  ;;  %2267 = vtanh.f32 %v760_v22 }
 0x129   :  { %v943_v48 = vpop.f32.mrb[26].mxu0  ;;  %v2248_v52 = vpop.eup %2247  ;;  %v764_v53 = vadd.f32 %v763_v43, %v3029_v45  ;;  %v660_v31 = vadd.f32 %v659_v20, %v650_v25  ;;  %2269 = vtanh.f32 %v940_v38  ;;  %v651_v9 = vmul.f32 %v2246_v42, %v3119_v3 }
 0x12a   :  { %v944_v54 = vadd.f32 %v943_v48, %v3029_v45  ;;  %v765_v55 = vpop.f32.mrb[27].mxu1  ;;  %v945_v56 = vpop.f32.mrb[27].mxu0  ;;  %v472_v63 = vmul.f32 %v2248_v52, %v3129_v40  ;;  %v493_v5 = vadd.f32 %v492_v27, %v471_v50 }
 0x12b   :  { %v2250_v59 = vpop.eup %2249  ;;  %v766_v61 = vadd.f32 %v765_v55, %v3031_v46  ;;  %v946_v62 = vadd.f32 %v945_v56, %v3031_v46  ;;  %2271 = vtanh.f32 %v764_v53  ;;  %v3139_v2 = vpop.permute.xlu1 %457  ;;  %v3154_v51 = vadd.f32 %v672_v16, %v651_v9 }
 0x12c   :  { %v2252_v1 = vpop.eup %2251  ;;  %3661 = vst [vmem:[#allocation13_spill] sm:$0xff] %v3139_v2  ;;  %v652_v4 = vmul.f32 %v2250_v59, %v3129_v40  ;;  %2273 = vtanh.f32 %v944_v54  ;;  %v769_v11 = vpop.f32.mrb[28].mxu1  ;;  %v481_v14 = vadd.f32 %v480_v49, %v472_v63 }
 0x12d   :  { %v2254_v10 = vpop.eup %2253  ;;  %v949_v13 = vpop.f32.mrb[28].mxu0  ;;  %v473_v15 = vmul.f32 %v2252_v1, %v3129_v40  ;;  %2275 = vtanh.f32 %v766_v61  ;;  %v770_v21 = vadd.f32 %v769_v11, %v3037_v57 }
 0x12e   :  { %v2256_v18 = vpop.eup %2255  ;;  %v950_v23 = vadd.f32 %v949_v13, %v3037_v57  ;;  %v771_v24 = vpop.f32.mrb[29].mxu1  ;;  %v661_v20 = vadd.f32 %v660_v31, %v652_v4  ;;  %2277 = vtanh.f32 %v946_v62  ;;  %v3151_v29 = vmul.f32 %v2254_v10, %v3129_v40 }
 0x12f   :  { %v951_v17 = vpop.f32.mrb[29].mxu0  ;;  %v2258_v37 = vpop.eup %2257  ;;  %v772_v22 = vadd.f32 %v771_v24, %v3039_v58  ;;  %v474_v30 = vmul.f32 %v2256_v18, %v3139_v2  ;;  %2279 = vtanh.f32 %v770_v21  ;;  %v494_v27 = vadd.f32 %v493_v5, %v473_v15 }
 0x130   :  { %v952_v38 = vadd.f32 %v951_v17, %v3039_v58  ;;  %v2260_v39 = vpop.eup %2259  ;;  %v654_v25 = vmul.f32 %v2258_v37, %v3139_v2  ;;  %2281 = vtanh.f32 %v950_v23  ;;  %v775_v43 = vpop.f32.mrb[30].mxu1 }
 0x131   :  { %v2262_v42 = vpop.eup %2261  ;;  %v955_v48 = vpop.f32.mrb[30].mxu0  ;;  %v482_v49 = vadd.f32 %v481_v14, %v474_v30  ;;  %v475_v50 = vmul.f32 %v2260_v39, %v3139_v2  ;;  %2283 = vtanh.f32 %v772_v22  ;;  %v776_v53 = vadd.f32 %v775_v43, %v3045_v7 }
 0x132   :  { %v2264_v52 = vpop.eup %2263  ;;  %v956_v54 = vadd.f32 %v955_v48, %v3045_v7  ;;  %v777_v55 = vpop.f32.mrb[31].mxu1  ;;  %v662_v31 = vadd.f32 %v661_v20, %v654_v25  ;;  %2285 = vtanh.f32 %v952_v38  ;;  %v3166_v16 = vmul.f32 %v2262_v42, %v3139_v2 }
 0x133   :  { %v957_v56 = vpop.f32.mrb[31].mxu0  ;;  %v2266_v59 = vpop.eup %2265  ;;  %v820_v61 = vmul.f32 %v2264_v52, %v3054_v19  ;;  %v778_v62 = vadd.f32 %v777_v55, %v3047_v8  ;;  %2287 = vtanh.f32 %v776_v53  ;;  %v483_v5 = vrot.slane %v482_v49, 4 }
 0x134   :  { %v958_v63 = vadd.f32 %v957_v56, %v3047_v8  ;;  %v2268_v1 = vpop.eup %2267  ;;  %v1000_v4 = vmul.f32 %v2266_v59, %v3054_v19  ;;  %v663_v9 = vrot.slane %v662_v31, 4  ;;  %2289 = vtanh.f32 %v956_v54  ;;  %v781_v13 = vpop.f32.mrb[32].mxu1 }
 0x135   :  { %v2270_v10 = vpop.eup %2269  ;;  %v821_v11 = vmul.f32 %v2268_v1, %v3054_v19  ;;  %v961_v14 = vpop.f32.mrb[32].mxu0  ;;  %v3163_v15 = vadd.f32 %v494_v27, %v475_v50  ;;  %2291 = vtanh.f32 %v778_v62  ;;  %v782_v23 = vadd.f32 %v781_v13, %v3052_v12 }
 0x136   :  { %v2272_v18 = vpop.eup %2271  ;;  %v1001_v21 = vmul.f32 %v2270_v10, %v3054_v19  ;;  %v962_v24 = vadd.f32 %v961_v14, %v3052_v12  ;;  %v783_v17 = vpop.f32.mrb[33].mxu1  ;;  %2293 = vtanh.f32 %v958_v63  ;;  %v3175_v27 = vadd.f32 %v483_v5, %v482_v49 }
 0x137   :  { %v963_v20 = vpop.f32.mrb[33].mxu0  ;;  %v2274_v37 = vpop.eup %2273  ;;  %v822_v22 = vmul.f32 %v2272_v18, %v3067_v60  ;;  %v784_v38 = vadd.f32 %v783_v17, %v3059_v0  ;;  %2295 = vtanh.f32 %v782_v23  ;;  %v3177_v42 = vadd.f32 %v663_v9, %v662_v31 }
 0x138   :  { %v964_v30 = vadd.f32 %v963_v20, %v3059_v0  ;;  %v2276_v39 = vpop.eup %2275  ;;  %v1002_v25 = vmul.f32 %v2274_v37, %v3067_v60  ;;  %2297 = vtanh.f32 %v962_v24  ;;  %v787_v52 = vpop.f32.mrb[34].mxu1  ;;  %v496_v54 = vrot.slane %v3163_v15, 4 }
 0x139   :  { %v2278_v43 = vpop.eup %2277  ;;  %v836_v48 = vadd.f32 %v822_v22, %v820_v61  ;;  %v823_v50 = vmul.f32 %v2276_v39, %v3067_v60  ;;  %v967_v53 = vpop.f32.mrb[34].mxu0  ;;  %2299 = vtanh.f32 %v784_v38  ;;  %v788_v62 = vadd.f32 %v787_v52, %v3062_v26 }
 0x13a   :  { %v2280_v55 = vpop.eup %2279  ;;  %v1016_v56 = vadd.f32 %v1002_v25, %v1000_v4  ;;  %v1003_v59 = vmul.f32 %v2278_v43, %v3067_v60  ;;  %v789_v49 = vpop.f32.mrb[35].mxu1  ;;  %2301 = vtanh.f32 %v964_v30  ;;  %v968_v5 = vadd.f32 %v967_v53, %v3062_v26 }
 0x13b   :  { %v969_v63 = vpop.f32.mrb[35].mxu0  ;;  %v2282_v31 = vpop.eup %2281  ;;  %v849_v1 = vadd.f32 %v823_v50, %v821_v11  ;;  %v824_v61 = vmul.f32 %v2280_v55, %v3087_v47  ;;  %2303 = vtanh.f32 %v788_v62  ;;  %v790_v4 = vadd.f32 %v789_v49, %v3065_v28 }
 0x13c   :  { %v2284_v9 = vpop.eup %2283  ;;  %v1029_v10 = vadd.f32 %v1003_v59, %v1001_v21  ;;  %v1004_v13 = vmul.f32 %v2282_v31, %v3087_v47  ;;  %2305 = vtanh.f32 %v968_v5  ;;  %v970_v24 = vadd.f32 %v969_v63, %v3065_v28  ;;  %v793_v11 = vpop.f32.mrb[36].mxu1 }
 0x13d   :  { %v2286_v14 = vpop.eup %2285  ;;  %v837_v18 = vadd.f32 %v836_v48, %v824_v61  ;;  %v825_v23 = vmul.f32 %v2284_v9, %v3087_v47  ;;  %v973_v17 = vpop.f32.mrb[36].mxu0  ;;  %2307 = vtanh.f32 %v790_v4  ;;  %v794_v21 = vadd.f32 %v793_v11, %v3070_v32 }
 0x13e   :  { %v2288_v20 = vpop.eup %2287  ;;  %v1017_v37 = vadd.f32 %v1016_v56, %v1004_v13  ;;  %v1005_v22 = vmul.f32 %v2286_v14, %v3087_v47  ;;  %v795_v38 = vpop.f32.mrb[37].mxu1  ;;  %2309 = vtanh.f32 %v970_v24  ;;  %v974_v48 = vadd.f32 %v973_v17, %v3070_v32 }
 0x13f   :  { %v975_v30 = vpop.f32.mrb[37].mxu0  ;;  %v2290_v39 = vpop.eup %2289  ;;  %v850_v25 = vadd.f32 %v849_v1, %v825_v23  ;;  %v826_v43 = vmul.f32 %v2288_v20, %v3098_v6  ;;  %2311 = vtanh.f32 %v794_v21  ;;  %v796_v55 = vadd.f32 %v795_v38, %v3073_v33 }
 0x140   :  { %v2292_v50 = vpop.eup %2291  ;;  %v1030_v52 = vadd.f32 %v1029_v10, %v1005_v22  ;;  %v1006_v53 = vmul.f32 %v2290_v39, %v3098_v6  ;;  %2313 = vtanh.f32 %v974_v48  ;;  %v976_v49 = vadd.f32 %v975_v30, %v3073_v33  ;;  %v799_v63 = vpop.f32.mrb[38].mxu1 }
 0x141   :  { %v2294_v56 = vpop.eup %2293  ;;  %v838_v59 = vadd.f32 %v837_v18, %v826_v43  ;;  %v827_v62 = vmul.f32 %v2292_v50, %v3098_v6  ;;  %v979_v31 = vpop.f32.mrb[38].mxu0  ;;  %2315 = vtanh.f32 %v796_v55  ;;  %v485_v9 = vrot.slane %v3175_v27, 2 }
 0x142   :  { %v2296_v1 = vpop.eup %2295  ;;  %v1018_v61 = vadd.f32 %v1017_v37, %v1006_v53  ;;  %v1007_v5 = vmul.f32 %v2294_v56, %v3098_v6  ;;  %v801_v10 = vpop.f32.mrb[39].mxu1  ;;  %2317 = vtanh.f32 %v976_v49  ;;  %v665_v23 = vrot.slane %v3177_v42, 2 }
 0x143   :  { %v3199_v13 = vpop.f32.mrb[39].mxu0  ;;  %v2298_v4 = vpop.eup %2297  ;;  %v851_v14 = vadd.f32 %v850_v25, %v827_v62  ;;  %v828_v18 = vmul.f32 %v2296_v1, %v3109_v41  ;;  %v486_v20 = vadd.f32 %v485_v9, %v3175_v27  ;;  %v800_v37 = vadd.f32 %v799_v63, %v3076_v34 }
 0x144   :  { %v2300_v24 = vpop.eup %2299  ;;  %v1031_v11 = vadd.f32 %v1030_v52, %v1007_v5  ;;  %v1008_v17 = vmul.f32 %v2298_v4, %v3109_v41  ;;  %v666_v30 = vadd.f32 %v665_v23, %v3177_v42  ;;  %v980_v39 = vadd.f32 %v979_v31, %v3076_v34  ;;  %v1117_v25 = vpop.f32.mrb[40].mxu1 }
 0x145   :  { %v2302_v22 = vpop.eup %2301  ;;  %v839_v21 = vadd.f32 %v838_v59, %v828_v18  ;;  %v829_v38 = vmul.f32 %v2300_v24, %v3109_v41  ;;  %v1297_v43 = vpop.f32.mrb[40].mxu0  ;;  %v487_v53 = vrot.slane %v486_v20, 1  ;;  %2319 = vtanh.f32 %v800_v37 }
 0x146   :  { %v2304_v48 = vpop.eup %2303  ;;  %v1019_v50 = vadd.f32 %v1018_v61, %v1008_v17  ;;  %v1009_v52 = vmul.f32 %v2302_v22, %v3109_v41  ;;  %v1119_v55 = vpop.f32.mrb[41].mxu1  ;;  %v667_v49 = vrot.slane %v666_v30, 1  ;;  %2321 = vtanh.f32 %v980_v39 }
 0x147   :  { %v1299_v27 = vpop.f32.mrb[41].mxu0  ;;  %v2306_v56 = vpop.eup %2305  ;;  %v852_v62 = vadd.f32 %v851_v14, %v829_v38  ;;  %v830_v59 = vmul.f32 %v2304_v48, %v3119_v3  ;;  %v488_v1 = vadd.f32 %v487_v53, %v486_v20  ;;  %v497_v61 = vadd.f32 %v496_v54, %v3163_v15 }
 0x148   :  { %v2308_v63 = vpop.eup %2307  ;;  %v1032_v42 = vadd.f32 %v1031_v11, %v1009_v52  ;;  %v1010_v31 = vmul.f32 %v2306_v56, %v3119_v3  ;;  %v668_v18 = vadd.f32 %v667_v49, %v666_v30  ;;  %v674_v14 = vadd.f32 %v3154_v51, %v3151_v29  ;;  %v1123_v23 = vpop.f32.mrb[42].mxu1 }
 0x149   :  { %v2310_v5 = vpop.eup %2309  ;;  %v840_v9 = vadd.f32 %v839_v21, %v830_v59  ;;  %v831_v4 = vmul.f32 %v2308_v63, %v3119_v3  ;;  %v1303_v24 = vpop.f32.mrb[42].mxu0  ;;  %v498_v22 = vrot.slane %v497_v61, 2  ;;  %v802_v20 = vadd.f32 %v801_v10, %v3085_v44 }
 0x14a   :  { %v2312_v17 = vpop.eup %2311  ;;  %v1020_v37 = vadd.f32 %v1019_v50, %v1010_v31  ;;  %v1011_v11 = vmul.f32 %v2310_v5, %v3119_v3  ;;  %v1125_v38 = vpop.f32.mrb[43].mxu1  ;;  %v3222_v30 = vsel %vm1762_vm1, %v488_v1, %v668_v18  ;;  %v675_v29 = vadd.f32 %v674_v14, %v3166_v16 }
 0x14b   :  { %v1305_v39 = vpop.f32.mrb[43].mxu0  ;;  %v2314_v15 = vpop.eup %2313  ;;  %v853_v54 = vadd.f32 %v852_v62, %v831_v4  ;;  %v832_v21 = vmul.f32 %v2312_v17, %v3129_v40  ;;  %v499_v52 = vadd.f32 %v498_v22, %v497_v61  ;;  %2323 = vtanh.f32 %v802_v20 }
 0x14c   :  { %v2316_v51 = vpop.eup %2315  ;;  %v1033_v48 = vadd.f32 %v1032_v42, %v1011_v11  ;;  %v1012_v50 = vmul.f32 %v2314_v15, %v3129_v40  ;;  %v676_v59 = vrot.slane %v675_v29, 4  ;;  %v982_v62 = vadd.f32 %v3199_v13, %v3085_v44  ;;  %v1129_v49 = vpop.f32.mrb[44].mxu1 }
 0x14d   :  { %v2318_v53 = vpop.eup %2317  ;;  %v841_v56 = vadd.f32 %v840_v9, %v832_v21  ;;  %v833_v10 = vmul.f32 %v2316_v51, %v3129_v40  ;;  %v1309_v63 = vpop.f32.mrb[44].mxu0  ;;  %v500_v16 = vrot.slane %v499_v52, 1  ;;  %v1118_v42 = vadd.f32 %v1117_v25, %v3021_v35 }
 0x14e   :  { %v1021_v31 = vadd.f32 %v1020_v37, %v1012_v50  ;;  %v1013_v1 = vmul.f32 %v2318_v53, %v3129_v40  ;;  %v1131_v5 = vpop.f32.mrb[45].mxu1  ;;  %v1311_v4 = vpop.f32.mrb[45].mxu0  ;;  %v677_v18 = vadd.f32 %v676_v59, %v675_v29  ;;  %2325 = vtanh.f32 %v982_v62 }
 0x14f   :  { %v854_v61 = vadd.f32 %v853_v54, %v833_v10  ;;  %v1298_v9 = vadd.f32 %v1297_v43, %v3021_v35  ;;  %v2320_v14 = vpop.eup %2319  ;;  %v501_v11 = vadd.f32 %v500_v16, %v499_v52  ;;  %2327 = vtanh.f32 %v1118_v42  ;;  %v1135_v15 = vpop.f32.mrb[46].mxu1 }
 0x150   :  { %v3232_v17 = vadd.f32 %v1033_v48, %v1013_v1  ;;  %v1120_v13 = vadd.f32 %v1119_v55, %v3023_v36  ;;  %v2322_v37 = vpop.eup %2321  ;;  %v834_v22 = vmul.f32 %v2320_v14, %v3139_v2  ;;  %v678_v20 = vrot.slane %v677_v18, 2  ;;  %v1315_v54 = vpop.f32.mrb[46].mxu0 }
 0x151   :  { %2329 = vtanh.f32 %v1298_v9  ;;  %v1300_v25 = vadd.f32 %v1299_v27, %v3023_v36  ;;  %v1014_v21 = vmul.f32 %v2322_v37, %v3139_v2  ;;  %v1124_v43 = vadd.f32 %v1123_v23, %v3029_v45  ;;  %v1137_v51 = vpop.f32.mrb[47].mxu1  ;;  %v3240_v48 = vpop.f32.mrb[47].mxu0 }
 0x152   :  { %2331 = vtanh.f32 %v1120_v13  ;;  %v1304_v29 = vadd.f32 %v1303_v24, %v3029_v45  ;;  %v842_v55 = vadd.f32 %v841_v56, %v834_v22  ;;  %v679_v50 = vadd.f32 %v678_v20, %v677_v18  ;;  %v3246_v24 = vpop.f32.mrb[48].mxu1  ;;  %v3248_v1 = vpop.f32.mrb[48].mxu0 }
 0x153   :  { %2333 = vtanh.f32 %v1300_v25  ;;  %v1126_v52 = vadd.f32 %v1125_v38, %v3031_v46  ;;  %v1022_v53 = vadd.f32 %v1021_v31, %v1014_v21  ;;  %v1306_v27 = vadd.f32 %v1305_v39, %v3031_v46  ;;  %v3252_v39 = vpop.f32.mrb[49].mxu1 }
 0x154   :  { %2335 = vtanh.f32 %v1124_v43  ;;  %v1130_v10 = vadd.f32 %v1129_v49, %v3037_v57  ;;  %v843_v59 = vrot.slane %v842_v55, 4  ;;  %v680_v62 = vrot.slane %v679_v50, 1  ;;  %v3254_v49 = vpop.f32.mrb[49].mxu0 }
 0x155   :  { %2337 = vtanh.f32 %v1304_v29  ;;  %v1310_v23 = vadd.f32 %v1309_v63, %v3037_v57  ;;  %v2324_v56 = vpop.eup %2323  ;;  %v1023_v16 = vrot.slane %v1022_v53, 4  ;;  %v1132_v38 = vadd.f32 %v1131_v5, %v3039_v58 }
 0x156   :  { %2339 = vtanh.f32 %v1126_v52  ;;  %v1312_v31 = vadd.f32 %v1311_v4, %v3039_v58  ;;  %v844_v42 = vadd.f32 %v843_v59, %v842_v55  ;;  %v681_v18 = vadd.f32 %v680_v62, %v679_v50  ;;  %v3262_v20 = vpop.f32.mrb[50].mxu1  ;;  %v3264_v25 = vpop.f32.mrb[50].mxu0 }
 0x157   :  { %v835_v63 = vmul.f32 %v2324_v56, %v3139_v2  ;;  %2341 = vtanh.f32 %v1306_v27  ;;  %v1024_v9 = vadd.f32 %v1023_v16, %v1022_v53  ;;  %v1136_v14 = vadd.f32 %v1135_v15, %v3045_v7  ;;  %v3268_v55 = vpop.f32.mrb[51].mxu1 }
 0x158   :  { %2343 = vtanh.f32 %v1130_v10  ;;  %v1316_v13 = vadd.f32 %v1315_v54, %v3045_v7  ;;  %v2326_v37 = vpop.eup %2325  ;;  %v845_v5 = vrot.slane %v844_v42, 2  ;;  %v3260_v4 = vsel %vm1762_vm1, %v501_v11, %v681_v18  ;;  %v3270_v54 = vpop.f32.mrb[51].mxu0 }
 0x159   :  { %v855_v22 = vadd.f32 %v854_v61, %v835_v63  ;;  %2345 = vtanh.f32 %v1310_v23  ;;  %v2328_v21 = vpop.eup %2327  ;;  %v1025_v43 = vrot.slane %v1024_v9, 2  ;;  %v1015_v29 = vmul.f32 %v2326_v37, %v3139_v2 }
 0x15a   :  { %2347 = vtanh.f32 %v1132_v38  ;;  %v1138_v15 = vadd.f32 %v1137_v51, %v3047_v8  ;;  %v846_v50 = vadd.f32 %v845_v5, %v844_v42  ;;  %v1180_v52 = vmul.f32 %v2328_v21, %v3054_v19  ;;  %v3276_v16 = vpop.f32.mrb[52].mxu1  ;;  %v3278_v38 = vpop.f32.mrb[52].mxu0 }
 0x15b   :  { %v2330_v61 = vpop.eup %2329  ;;  %v856_v11 = vrot.slane %v855_v22, 4  ;;  %2349 = vtanh.f32 %v1312_v31  ;;  %v1026_v27 = vadd.f32 %v1025_v43, %v1024_v9  ;;  %v1035_v10 = vadd.f32 %v3232_v17, %v1015_v29  ;;  %v3281_v17 = vpop.f32.mrb[53].mxu1 }
 0x15c   :  { %v2332_v53 = vpop.eup %2331  ;;  %v1360_v59 = vmul.f32 %v2330_v61, %v3054_v19  ;;  %2351 = vtanh.f32 %v1136_v14  ;;  %v847_v23 = vrot.slane %v846_v50, 1  ;;  %v3283_v9 = vpop.f32.mrb[53].mxu0 }
 0x15d   :  { %v2334_v62 = vpop.eup %2333  ;;  %v857_v51 = vadd.f32 %v856_v11, %v855_v22  ;;  %v1181_v56 = vmul.f32 %v2332_v53, %v3054_v19  ;;  %2353 = vtanh.f32 %v1316_v13  ;;  %v1027_v18 = vrot.slane %v1026_v27, 1 }
 0x15e   :  { %v2336_v42 = vpop.eup %2335  ;;  %v1036_v31 = vrot.slane %v1035_v10, 4  ;;  %v1361_v63 = vmul.f32 %v2334_v62, %v3054_v19  ;;  %2355 = vtanh.f32 %v1138_v15  ;;  %v848_v37 = vadd.f32 %v847_v23, %v846_v50  ;;  %v3296_v19 = vpop.f32.mrb[54].mxu0 }
 0x15f   :  { %v2338_v14 = vpop.eup %2337  ;;  %v858_v5 = vrot.slane %v857_v51, 2  ;;  %v1182_v22 = vmul.f32 %v2336_v42, %v3067_v60  ;;  %v1318_v13 = vadd.f32 %v3240_v48, %v3047_v8  ;;  %v1028_v43 = vadd.f32 %v1027_v18, %v1026_v27  ;;  %v3294_v42 = vpop.f32.mrb[54].mxu1 }
 0x160   :  { %v2340_v21 = vpop.eup %2339  ;;  %v1037_v29 = vadd.f32 %v1036_v31, %v1035_v10  ;;  %v1362_v61 = vmul.f32 %v2338_v14, %v3067_v60  ;;  %v1142_v15 = vadd.f32 %v3246_v24, %v3052_v12  ;;  %v1766_v53 = vsel %vm1765_vm2, %v3222_v30, %v848_v37  ;;  %v1161_v31 = vpop.f32.mrb[55].mxu1 }
 0x161   :  { %v2342_v11 = vpop.eup %2341  ;;  %v859_v62 = vadd.f32 %v858_v5, %v857_v51  ;;  %v1196_v50 = vadd.f32 %v1182_v22, %v1180_v52  ;;  %v1183_v23 = vmul.f32 %v2340_v21, %v3067_v60  ;;  %v3299_v27 = vsel %vm1768_vm3, %v1766_v53, %v1028_v43  ;;  %v3302_v14 = vpop.f32.mrb[55].mxu0 }
 0x162   :  { %v2344_v48 = vpop.eup %2343  ;;  %3662 = vst [vmem:[#allocation14_spill] sm:$0xff] %v3299_v27  ;;  %v1038_v10 = vrot.slane %v1037_v29, 2  ;;  %v1376_v18 = vadd.f32 %v1362_v61, %v1360_v59  ;;  %v1363_v24 = vmul.f32 %v2342_v11, %v3067_v60  ;;  %2357 = vtanh.f32 %v1318_v13  ;;  %v1477_v27 = vpop.f32.mrb[56].mxu1 }
 0x163   :  { %v2346_v30 = vpop.eup %2345  ;;  %v860_v51 = vrot.slane %v859_v62, 1  ;;  %v1209_v52 = vadd.f32 %v1183_v23, %v1181_v56  ;;  %v1184_v37 = vmul.f32 %v2344_v48, %v3087_v47  ;;  %2359 = vtanh.f32 %v1142_v15  ;;  %v1657_v60 = vpop.f32.mrb[56].mxu0 }
 0x164   :  { %v2348_v5 = vpop.eup %2347  ;;  %v1039_v22 = vadd.f32 %v1038_v10, %v1037_v29  ;;  %v1389_v21 = vadd.f32 %v1363_v24, %v1361_v63  ;;  %v1364_v2 = vmul.f32 %v2346_v30, %v3087_v47  ;;  %v1322_v11 = vadd.f32 %v3248_v1, %v3052_v12  ;;  %v1479_v29 = vpop.f32.mrb[57].mxu1 }
 0x165   :  { %v2350_v43 = vpop.eup %2349  ;;  %v861_v53 = vadd.f32 %v860_v51, %v859_v62  ;;  %v1197_v59 = vadd.f32 %v1196_v50, %v1184_v37  ;;  %v1185_v61 = vmul.f32 %v2348_v5, %v3087_v47  ;;  %v1144_v63 = vadd.f32 %v3252_v39, %v3059_v0  ;;  %v1659_v15 = vpop.f32.mrb[57].mxu0 }
 0x166   :  { %v2352_v56 = vpop.eup %2351  ;;  %v1040_v23 = vrot.slane %v1039_v22, 1  ;;  %v1377_v48 = vadd.f32 %v1376_v18, %v1364_v2  ;;  %v1365_v13 = vmul.f32 %v2350_v43, %v3087_v47  ;;  %2361 = vtanh.f32 %v1322_v11 }
 0x167   :  { %v2354_v10 = vpop.eup %2353  ;;  %v1767_v62 = vsel %vm1765_vm2, %v3260_v4, %v861_v53  ;;  %v1210_v50 = vadd.f32 %v1209_v52, %v1185_v61  ;;  %v1186_v24 = vmul.f32 %v2352_v56, %v3098_v6  ;;  %2363 = vtanh.f32 %v1144_v63  ;;  %v1483_v4 = vpop.f32.mrb[58].mxu1 }
 0x168   :  { %v2356_v1 = vpop.eup %2355  ;;  %v1041_v30 = vadd.f32 %v1040_v23, %v1039_v22  ;;  %v1390_v51 = vadd.f32 %v1389_v21, %v1365_v13  ;;  %v1366_v2 = vmul.f32 %v2354_v10, %v3098_v6  ;;  %v1324_v39 = vadd.f32 %v3254_v49, %v3059_v0  ;;  %v1663_v52 = vpop.f32.mrb[58].mxu0 }
 0x169   :  { %v1198_v18 = vadd.f32 %v1197_v59, %v1186_v24  ;;  %v1187_v37 = vmul.f32 %v2356_v1, %v3098_v6  ;;  %v1148_v5 = vadd.f32 %v3262_v20, %v3062_v26  ;;  %v1328_v22 = vadd.f32 %v3264_v25, %v3062_v26  ;;  %v1485_v59 = vpop.f32.mrb[59].mxu1  ;;  %v1665_v61 = vpop.f32.mrb[59].mxu0 }
 0x16a   :  { %v3322_v43 = vsel %vm1768_vm3, %v1767_v62, %v1041_v30  ;;  %v1378_v53 = vadd.f32 %v1377_v48, %v1366_v2  ;;  %v1150_v21 = vadd.f32 %v3268_v55, %v3065_v28  ;;  %2365 = vtanh.f32 %v1324_v39  ;;  %v1489_v13 = vpop.f32.mrb[60].mxu1  ;;  %v1669_v63 = vpop.f32.mrb[60].mxu0 }
 0x16b   :  { %v1211_v11 = vadd.f32 %v1210_v50, %v1187_v37  ;;  %v1330_v49 = vadd.f32 %v3270_v54, %v3065_v28  ;;  %v1154_v20 = vadd.f32 %v3276_v16, %v3070_v32  ;;  %2367 = vtanh.f32 %v1148_v5  ;;  %v1491_v62 = vpop.f32.mrb[61].mxu1  ;;  %v1671_v50 = vpop.f32.mrb[61].mxu0 }
 0x16c   :  { %v1334_v56 = vadd.f32 %v3278_v38, %v3070_v32  ;;  %v1156_v25 = vadd.f32 %v3281_v17, %v3073_v33  ;;  %v1336_v55 = vadd.f32 %v3283_v9, %v3073_v33  ;;  %v2358_v23 = vpop.eup %2357  ;;  %2369 = vtanh.f32 %v1328_v22 }
 0x16d   :  { %v1160_v48 = vadd.f32 %v3294_v42, %v3076_v34  ;;  %v1340_v54 = vadd.f32 %v3296_v19, %v3076_v34  ;;  %v1162_v16 = vadd.f32 %v1161_v31, %v3085_v44  ;;  %v2360_v10 = vpop.eup %2359  ;;  %v1367_v38 = vmul.f32 %v2358_v23, %v3098_v6 }
 0x16e   :  { %2371 = vtanh.f32 %v1150_v21  ;;  %v1342_v17 = vadd.f32 %v3302_v14, %v3085_v44  ;;  %v1478_v9 = vadd.f32 %v1477_v27, %v3021_v35  ;;  %v1188_v42 = vmul.f32 %v2360_v10, %v3109_v41 }
 0x16f   :  { %2373 = vtanh.f32 %v1330_v49  ;;  %v1658_v19 = vadd.f32 %v1657_v60, %v3021_v35  ;;  %v1480_v31 = vadd.f32 %v1479_v29, %v3023_v36  ;;  %v1391_v24 = vadd.f32 %v1390_v51, %v1367_v38  ;;  %v1495_v35 = vpop.f32.mrb[62].mxu1  ;;  %v1675_v60 = vpop.f32.mrb[62].mxu0 }
 0x170   :  { %2375 = vtanh.f32 %v1154_v20  ;;  %v3351_v1 = vadd.f32 %v1659_v15, %v3023_v36  ;;  %v3354_v30 = vadd.f32 %v1483_v4, %v3029_v45  ;;  %v2362_v14 = vpop.eup %2361  ;;  %v1199_v2 = vadd.f32 %v1198_v18, %v1188_v42  ;;  %v1497_v18 = vpop.f32.mrb[63].mxu1 }
 0x171   :  { %2377 = vtanh.f32 %v1334_v56  ;;  %v3357_v27 = vadd.f32 %v1663_v52, %v3029_v45  ;;  %v3360_v37 = vadd.f32 %v1485_v59, %v3031_v46  ;;  %v2364_v29 = vpop.eup %2363  ;;  %v1368_v51 = vmul.f32 %v2362_v14, %v3109_v41  ;;  %v1677_v39 = vpop.f32.mrb[63].mxu0 }
 0x172   :  { %2379 = vtanh.f32 %v1156_v25  ;;  %v3364_v36 = vadd.f32 %v1665_v61, %v3031_v46  ;;  %v3367_v15 = vadd.f32 %v1489_v13, %v3037_v57  ;;  %v1189_v45 = vmul.f32 %v2364_v29, %v3109_v41  ;;  %v1501_v49 = vpop.f32.mrb[64].mxu1  ;;  %v1681_v20 = vpop.f32.mrb[64].mxu0 }
 0x173   :  { %2381 = vtanh.f32 %v1336_v55  ;;  %v3371_v5 = vadd.f32 %v1669_v63, %v3037_v57  ;;  %v3374_v4 = vadd.f32 %v1491_v62, %v3039_v58  ;;  %v1379_v52 = vadd.f32 %v1378_v53, %v1368_v51  ;;  %v1683_v55 = vpop.f32.mrb[65].mxu0 }
 0x174   :  { %2383 = vtanh.f32 %v1160_v48  ;;  %v3377_v22 = vadd.f32 %v1671_v50, %v3039_v58  ;;  %v3380_v46 = vadd.f32 %v1495_v35, %v3045_v7  ;;  %v2366_v21 = vpop.eup %2365  ;;  %v1212_v59 = vadd.f32 %v1211_v11, %v1189_v45  ;;  %v1503_v11 = vpop.f32.mrb[65].mxu1 }
 0x175   :  { %2385 = vtanh.f32 %v1340_v54  ;;  %v3383_v61 = vadd.f32 %v1675_v60, %v3045_v7  ;;  %v3386_v57 = vadd.f32 %v1497_v18, %v3047_v8  ;;  %v2368_v56 = vpop.eup %2367  ;;  %v1369_v53 = vmul.f32 %v2366_v21, %v3109_v41 }
 0x176   :  { %2387 = vtanh.f32 %v1162_v16  ;;  %v3390_v58 = vadd.f32 %v1677_v39, %v3047_v8  ;;  %v3393_v25 = vadd.f32 %v1501_v49, %v3052_v12  ;;  %v2370_v23 = vpop.eup %2369  ;;  %v1190_v7 = vmul.f32 %v2368_v56, %v3119_v3  ;;  %v1687_v50 = vpop.f32.mrb[66].mxu0 }
 0x177   :  { %2389 = vtanh.f32 %v1342_v17  ;;  %v3397_v48 = vadd.f32 %v1681_v20, %v3052_v12  ;;  %v3400_v54 = vadd.f32 %v1503_v11, %v3059_v0  ;;  %v1392_v16 = vadd.f32 %v1391_v24, %v1369_v53  ;;  %v1507_v17 = vpop.f32.mrb[66].mxu1 }
 0x178   :  { %v2372_v13 = vpop.eup %2371  ;;  %v1370_v8 = vmul.f32 %v2370_v23, %v3119_v3  ;;  %2391 = vtanh.f32 %v1478_v9  ;;  %v3404_v63 = vadd.f32 %v1683_v55, %v3059_v0  ;;  %v1200_v38 = vadd.f32 %v1199_v2, %v1190_v7  ;;  %v1509_v35 = vpop.f32.mrb[67].mxu1  ;;  %v3663_v23 = vld [vmem:[#allocation13_spill] sm:$0xff] }
 0x179   :  { %v2374_v10 = vpop.eup %2373  ;;  %v1191_v62 = vmul.f32 %v2372_v13, %v3119_v3  ;;  %2393 = vtanh.f32 %v1658_v19  ;;  %v3409_v24 = vadd.f32 %v1507_v17, %v3062_v26  ;;  %v1689_v9 = vpop.f32.mrb[67].mxu0  ;;  %v3414_v19 = vadd.f32 %v1687_v50, %v3062_v26 }
 0x17a   :  { %v2376_v12 = vpop.eup %2375  ;;  %v1380_v42 = vadd.f32 %v1379_v52, %v1370_v8  ;;  %v1371_v14 = vmul.f32 %v2374_v10, %v3119_v3  ;;  %2395 = vtanh.f32 %v1480_v31  ;;  %v3419_v31 = vadd.f32 %v1509_v35, %v3065_v28  ;;  %v1513_v26 = vpop.f32.mrb[68].mxu1 }
 0x17b   :  { %v2378_v60 = vpop.eup %2377  ;;  %v1213_v0 = vadd.f32 %v1212_v59, %v1191_v62  ;;  %v1192_v29 = vmul.f32 %v2376_v12, %v3129_v40  ;;  %2397 = vtanh.f32 %v3351_v1  ;;  %v3424_v1 = vadd.f32 %v1689_v9, %v3065_v28  ;;  %v1693_v21 = vpop.f32.mrb[68].mxu0  ;;  %v3664_v9 = vld [vmem:[#allocation11_spill] sm:$0xff] }
 0x17c   :  { %v2380_v2 = vpop.eup %2379  ;;  %v1393_v51 = vadd.f32 %v1392_v16, %v1371_v14  ;;  %v1372_v18 = vmul.f32 %v2378_v60, %v3129_v40  ;;  %2399 = vtanh.f32 %v3354_v30  ;;  %v3429_v30 = vadd.f32 %v1513_v26, %v3070_v32  ;;  %v1515_v56 = vpop.f32.mrb[69].mxu1 }
 0x17d   :  { %v2382_v39 = vpop.eup %2381  ;;  %v1201_v45 = vadd.f32 %v1200_v38, %v1192_v29  ;;  %v1193_v52 = vmul.f32 %v2380_v2, %v3129_v40  ;;  %2401 = vtanh.f32 %v3357_v27  ;;  %v1695_v53 = vpop.f32.mrb[69].mxu0  ;;  %v3434_v28 = vadd.f32 %v1693_v21, %v3070_v32 }
 0x17e   :  { %v2384_v59 = vpop.eup %2383  ;;  %v1381_v49 = vadd.f32 %v1380_v42, %v1372_v18  ;;  %v1373_v20 = vmul.f32 %v2382_v39, %v3129_v40  ;;  %2403 = vtanh.f32 %v3360_v37  ;;  %v3439_v37 = vadd.f32 %v1515_v56, %v3073_v33  ;;  %v1519_v32 = vpop.f32.mrb[70].mxu1  ;;  %v3665_v56 = vld [vmem:[#allocation12_spill] sm:$0xff] }
 0x17f   :  { %v2386_v11 = vpop.eup %2385  ;;  %v1214_v55 = vadd.f32 %v1213_v0, %v1193_v52  ;;  %v1194_v27 = vmul.f32 %v2384_v59, %v3663_v23  ;;  %2405 = vtanh.f32 %v3364_v36  ;;  %v3444_v36 = vadd.f32 %v1695_v53, %v3073_v33  ;;  %v3446_v62 = vpop.f32.mrb[70].mxu0 }
 0x180   :  { %v2388_v7 = vpop.eup %2387  ;;  %v1394_v13 = vadd.f32 %v1393_v51, %v1373_v20  ;;  %v1374_v16 = vmul.f32 %v2386_v11, %v3663_v23  ;;  %2407 = vtanh.f32 %v3367_v15  ;;  %v3451_v15 = vadd.f32 %v1519_v32, %v3076_v34  ;;  %v3453_v42 = vpop.f32.mrb[71].mxu1 }
 0x181   :  { %v2390_v8 = vpop.eup %2389  ;;  %v1202_v10 = vadd.f32 %v1201_v45, %v1194_v27  ;;  %v1195_v38 = vmul.f32 %v2388_v7, %v3663_v23  ;;  %2409 = vtanh.f32 %v3371_v5  ;;  %v3455_v14 = vpop.f32.mrb[71].mxu0 }
 0x182   :  { %v2392_v17 = vpop.eup %2391  ;;  %v1382_v50 = vadd.f32 %v1381_v49, %v1374_v16  ;;  %v1375_v12 = vmul.f32 %v2390_v8, %v3663_v23  ;;  %2411 = vtanh.f32 %v3374_v4 }
 0x183   :  { %v2394_v5 = vpop.eup %2393  ;;  %v1203_v35 = vrot.slane %v1202_v10, 4  ;;  %v1215_v33 = vadd.f32 %v1214_v55, %v1195_v38  ;;  %v1540_v60 = vmul.f32 %v2392_v17, %v3664_v9  ;;  %2413 = vtanh.f32 %v3377_v22 }
 0x184   :  { %v2396_v0 = vpop.eup %2395  ;;  %v1383_v29 = vrot.slane %v1382_v50, 4  ;;  %v1395_v2 = vadd.f32 %v1394_v13, %v1375_v12  ;;  %v1720_v4 = vmul.f32 %v2394_v5, %v3664_v9  ;;  %2415 = vtanh.f32 %v3380_v46 }
 0x185   :  { %v2398_v51 = vpop.eup %2397  ;;  %v1204_v18 = vadd.f32 %v1203_v35, %v1202_v10  ;;  %v1216_v39 = vrot.slane %v1215_v33, 4  ;;  %v1541_v45 = vmul.f32 %v2396_v0, %v3664_v9  ;;  %2417 = vtanh.f32 %v3383_v61 }
 0x186   :  { %v2400_v52 = vpop.eup %2399  ;;  %v1384_v26 = vadd.f32 %v1383_v29, %v1382_v50  ;;  %v1396_v21 = vrot.slane %v1395_v2, 4  ;;  %v1721_v22 = vmul.f32 %v2398_v51, %v3664_v9  ;;  %2419 = vtanh.f32 %v3386_v57 }
 0x187   :  { %v2402_v59 = vpop.eup %2401  ;;  %v1205_v49 = vrot.slane %v1204_v18, 2  ;;  %v1217_v20 = vadd.f32 %v1216_v39, %v1215_v33  ;;  %v1542_v46 = vmul.f32 %v2400_v52, %v3665_v56  ;;  %2421 = vtanh.f32 %v3390_v58 }
 0x188   :  { %v2404_v53 = vpop.eup %2403  ;;  %v1385_v11 = vrot.slane %v1384_v26, 2  ;;  %v1397_v55 = vadd.f32 %v1396_v21, %v1395_v2  ;;  %v1722_v27 = vmul.f32 %v2402_v59, %v3665_v56  ;;  %2423 = vtanh.f32 %v3393_v25 }
 0x189   :  { %v2406_v61 = vpop.eup %2405  ;;  %v1206_v7 = vadd.f32 %v1205_v49, %v1204_v18  ;;  %v1218_v13 = vrot.slane %v1217_v20, 2  ;;  %v1556_v16 = vadd.f32 %v1542_v46, %v1540_v60  ;;  %v1543_v57 = vmul.f32 %v2404_v53, %v3665_v56  ;;  %v3666_v49 = vld [vmem:[#allocation14_spill] sm:$0xff] }
 0x18a   :  { %v2408_v8 = vpop.eup %2407  ;;  %v1386_v10 = vadd.f32 %v1385_v11, %v1384_v26  ;;  %v1398_v38 = vrot.slane %v1397_v55, 2  ;;  %v1736_v32 = vadd.f32 %v1722_v27, %v1720_v4  ;;  %v1723_v17 = vmul.f32 %v2406_v61, %v3665_v56 }
 0x18b   :  { %v2410_v58 = vpop.eup %2409  ;;  %v1207_v50 = vrot.slane %v1206_v7, 1  ;;  %v1219_v12 = vadd.f32 %v1218_v13, %v1217_v20  ;;  %v1569_v5 = vadd.f32 %v1543_v57, %v1541_v45  ;;  %v1544_v35 = vmul.f32 %v2408_v8, %v3087_v47 }
 0x18c   :  { %v2412_v33 = vpop.eup %2411  ;;  %v1387_v25 = vrot.slane %v1386_v10, 1  ;;  %v1399_v9 = vadd.f32 %v1398_v38, %v1397_v55  ;;  %v1749_v0 = vadd.f32 %v1723_v17, %v1721_v22  ;;  %v1724_v60 = vmul.f32 %v2410_v58, %v3087_v47 }
 0x18d   :  { %v2414_v29 = vpop.eup %2413  ;;  %v1208_v2 = vadd.f32 %v1207_v50, %v1206_v7  ;;  %v1220_v51 = vrot.slane %v1219_v12, 1  ;;  %v1557_v18 = vadd.f32 %v1556_v16, %v1544_v35  ;;  %v1545_v4 = vmul.f32 %v2412_v33, %v3087_v47 }
 0x18e   :  { %v2416_v39 = vpop.eup %2415  ;;  %v1388_v52 = vadd.f32 %v1387_v25, %v1386_v10  ;;  %v1400_v26 = vrot.slane %v1399_v9, 1  ;;  %v1737_v21 = vadd.f32 %v1736_v32, %v1724_v60  ;;  %v1725_v45 = vmul.f32 %v2414_v29, %v3087_v47 }
 0x18f   :  { %v2418_v59 = vpop.eup %2417  ;;  %v1772_v20 = vsel %vm1771_vm4, %v3666_v49, %v1208_v2  ;;  %v1221_v56 = vadd.f32 %v1220_v51, %v1219_v12  ;;  %v1570_v22 = vadd.f32 %v1569_v5, %v1545_v4  ;;  %v1546_v46 = vmul.f32 %v2416_v39, %v3098_v6 }
 0x190   :  { %v2420_v53 = vpop.eup %2419  ;;  %v3479_v11 = vsel %vm1774_vm5, %v1772_v20, %v1388_v52  ;;  %v1401_v55 = vadd.f32 %v1400_v26, %v1399_v9  ;;  %v1750_v27 = vadd.f32 %v1749_v0, %v1725_v45  ;;  %v1726_v61 = vmul.f32 %v2418_v59, %v3098_v6 }
 0x191   :  { %v2422_v7 = vpop.eup %2421  ;;  %v1773_v47 = vsel %vm1771_vm4, %v3322_v43, %v1221_v56  ;;  %v1558_v13 = vadd.f32 %v1557_v18, %v1546_v46  ;;  %v1547_v16 = vmul.f32 %v2420_v53, %v3098_v6  ;;  %2425 = vtanh.f32 %v3397_v48 }
 0x192   :  { %v2424_v57 = vpop.eup %2423  ;;  %v3487_v8 = vsel %vm1774_vm5, %v1773_v47, %v1401_v55  ;;  %v1738_v10 = vadd.f32 %v1737_v21, %v1726_v61  ;;  %v1727_v38 = vmul.f32 %v2422_v7, %v3098_v6  ;;  %2427 = vtanh.f32 %v3400_v54 }
 0x193   :  { %v1571_v32 = vadd.f32 %v1570_v22, %v1547_v16  ;;  %v1548_v17 = vmul.f32 %v2424_v57, %v3109_v41  ;;  %2429 = vtanh.f32 %v3404_v63  ;;  %v1700_v43 = vadd.f32 %v3446_v62, %v3076_v34 }
 0x194   :  { %v1751_v58 = vadd.f32 %v1750_v27, %v1727_v38  ;;  %2431 = vtanh.f32 %v3409_v24  ;;  %v1522_v48 = vadd.f32 %v3453_v42, %v3085_v44  ;;  %v1702_v6 = vadd.f32 %v3455_v14, %v3085_v44 }
 0x195   :  { %v1559_v50 = vadd.f32 %v1558_v13, %v1548_v17  ;;  %2433 = vtanh.f32 %v3414_v19 }
 0x196   :  { %2435 = vtanh.f32 %v3419_v31 }
 0x197   :  { %2437 = vtanh.f32 %v3424_v1 }
 0x198   :  { %2439 = vtanh.f32 %v3429_v30 }
 0x199   :  { %2441 = vtanh.f32 %v3434_v28 }
 0x19a   :  { %2443 = vtanh.f32 %v3439_v37 }
 0x19b   :  { %v2426_v34 = vpop.eup %2425  ;;  %2445 = vtanh.f32 %v3444_v36 }
 0x19c   :  { %v2428_v54 = vpop.eup %2427  ;;  %v1728_v63 = vmul.f32 %v2426_v34, %v3109_v41  ;;  %2447 = vtanh.f32 %v3451_v15 }
 0x19d   :  { %v2430_v24 = vpop.eup %2429  ;;  %v1549_v44 = vmul.f32 %v2428_v54, %v3109_v41  ;;  %2449 = vtanh.f32 %v1700_v43 }
 0x19e   :  { %v2432_v19 = vpop.eup %2431  ;;  %v1739_v31 = vadd.f32 %v1738_v10, %v1728_v63  ;;  %v1729_v1 = vmul.f32 %v2430_v24, %v3109_v41  ;;  %2451 = vtanh.f32 %v1522_v48 }
 0x19f   :  { %v2434_v30 = vpop.eup %2433  ;;  %v1572_v28 = vadd.f32 %v1571_v32, %v1549_v44  ;;  %v1550_v37 = vmul.f32 %v2432_v19, %v3119_v3  ;;  %2453 = vtanh.f32 %v1702_v6 }
 0x1a0   :  { %v2436_v36 = vpop.eup %2435  ;;  %v1752_v62 = vadd.f32 %v1751_v58, %v1729_v1  ;;  %v1730_v42 = vmul.f32 %v2434_v30, %v3119_v3 }
 0x1a1   :  { %v2438_v14 = vpop.eup %2437  ;;  %v1560_v15 = vadd.f32 %v1559_v50, %v1550_v37  ;;  %v1551_v12 = vmul.f32 %v2436_v36, %v3119_v3 }
 0x1a2   :  { %v2440_v5 = vpop.eup %2439  ;;  %v1740_v35 = vadd.f32 %v1739_v31, %v1730_v42  ;;  %v1731_v33 = vmul.f32 %v2438_v14, %v3119_v3 }
 0x1a3   :  { %v2442_v25 = vpop.eup %2441  ;;  %v1573_v41 = vadd.f32 %v1572_v28, %v1551_v12  ;;  %v1552_v9 = vmul.f32 %v2440_v5, %v3129_v40 }
 0x1a4   :  { %v2444_v0 = vpop.eup %2443  ;;  %v1753_v60 = vadd.f32 %v1752_v62, %v1731_v33  ;;  %v1732_v29 = vmul.f32 %v2442_v25, %v3129_v40 }
 0x1a5   :  { %v2446_v2 = vpop.eup %2445  ;;  %v1561_v51 = vadd.f32 %v1560_v15, %v1552_v9  ;;  %v1553_v18 = vmul.f32 %v2444_v0, %v3129_v40 }
 0x1a6   :  { %v2448_v4 = vpop.eup %2447  ;;  %v1741_v39 = vadd.f32 %v1740_v35, %v1732_v29  ;;  %v1733_v52 = vmul.f32 %v2446_v2, %v3129_v40 }
 0x1a7   :  { %v2450_v26 = vpop.eup %2449  ;;  %v1574_v21 = vadd.f32 %v1573_v41, %v1553_v18  ;;  %v1554_v3 = vmul.f32 %v2448_v4, %v3663_v23 }
 0x1a8   :  { %v2452_v45 = vpop.eup %2451  ;;  %v1754_v59 = vadd.f32 %v1753_v60, %v1733_v52  ;;  %v1734_v49 = vmul.f32 %v2450_v26, %v3663_v23 }
 0x1a9   :  { %v2454_v20 = vpop.eup %2453  ;;  %v1562_v56 = vadd.f32 %v1561_v51, %v1554_v3  ;;  %v1555_v22 = vmul.f32 %v2452_v45, %v3663_v23 }
 0x1aa   :  { %v1742_v46 = vadd.f32 %v1741_v39, %v1734_v49  ;;  %v1735_v53 = vmul.f32 %v2454_v20, %v3663_v23 }
 0x1ab   :  { %v1563_v55 = vrot.slane %v1562_v56, 4  ;;  %v1575_v27 = vadd.f32 %v1574_v21, %v1555_v22 }
 0x1ac   :  { %v1743_v61 = vrot.slane %v1742_v46, 4  ;;  %v1755_v7 = vadd.f32 %v1754_v59, %v1735_v53 }
 0x1ad   :  { %v1564_v40 = vadd.f32 %v1563_v55, %v1562_v56  ;;  %v1576_v47 = vrot.slane %v1575_v27, 4  ;;  %v1817_v56 = vlaneseq }
 0x1ae   :  { %v1744_v13 = vadd.f32 %v1743_v61, %v1742_v46  ;;  %v1756_v16 = vrot.slane %v1755_v7, 4 }
 0x1af   :  { %v1565_v57 = vrot.slane %v1564_v40, 2  ;;  %v1577_v10 = vadd.f32 %v1576_v47, %v1575_v27  ;;  %v3525_v22 = vshrl.u32 %v1817_v56, 7 }
 0x1b0   :  { %v1745_v38 = vrot.slane %v1744_v13, 2  ;;  %v1757_v32 = vadd.f32 %v1756_v16, %v1755_v7 }
 0x1b1   :  { %v1566_v17 = vadd.f32 %v1565_v57, %v1564_v40  ;;  %v1578_v43 = vrot.slane %v1577_v10, 2  ;;  %v1819_v46 = vsub.s32 0, %v3525_v22  ;;  %v1835_v53 = vsub.s32 1, %v3525_v22 }
 0x1b2   :  { %v1746_v58 = vadd.f32 %v1745_v38, %v1744_v13  ;;  %v1758_v48 = vrot.slane %v1757_v32, 2  ;;  %v1859_v27 = vsub.s32 2, %v3525_v22  ;;  %v1883_v61 = vsub.s32 3, %v3525_v22 }
 0x1b3   :  { %v1567_v50 = vrot.slane %v1566_v17, 1  ;;  %v1579_v6 = vadd.f32 %v1578_v43, %v1577_v10  ;;  %v1907_v47 = vsub.s32 4, %v3525_v22  ;;  %v1931_v10 = vsub.s32 5, %v3525_v22 }
 0x1b4   :  { %v1747_v23 = vrot.slane %v1746_v58, 1  ;;  %v1759_v34 = vadd.f32 %v1758_v48, %v1757_v32  ;;  %v1979_v43 = vsub.s32 7, %v3525_v22  ;;  %v2463_v48 = vld [vmem:[#allocation2] sm:$0xff] }
 0x1b5   :  { %v1568_v54 = vadd.f32 %v1567_v50, %v1566_v17  ;;  %v1580_v63 = vrot.slane %v1579_v6, 1  ;;  %v1955_v17 = vsub.s32 6, %v3525_v22 }
 0x1b6   :  { %v1748_v24 = vadd.f32 %v1747_v23, %v1746_v58  ;;  %v1760_v44 = vrot.slane %v1759_v34, 1 }
 0x1b7   :  { %v1778_v19 = vsel %vm1777_vm6, %v3479_v11, %v1568_v54  ;;  %v1581_v31 = vadd.f32 %v1580_v63, %v1579_v6  ;;  %v2464_v6 = vld [vmem:[#allocation2 + $0x10] sm:$0xff] }
 0x1b8   :  { %v1781_v1 = vsel %vm1780_vm7, %v1778_v19, %v1748_v24  ;;  %v1761_v30 = vadd.f32 %v1760_v44, %v1759_v34  ;;  %v2465_v34 = vld [vmem:[#allocation2 + $0x20] sm:$0xff]  ;;  %v2466_v63 = vld [vmem:[#allocation2 + $0x30] sm:$0xff] }
 0x1b9   :  { %v1783_v28 = vrot.slane %v1781_v1, 4  ;;  %v1779_v37 = vsel %vm1777_vm6, %v3487_v8, %v1581_v31  ;;  %v2467_v19 = vld [vmem:[#allocation2 + $0x40] sm:$0xff] }
 0x1ba   :  { %v1782_v36 = vsel %vm1780_vm7, %v1779_v37, %v1761_v30 }
 0x1bb   :  { %v1784_v62 = vmax.f32 %v1781_v1, %v1783_v28  ;;  %v1789_v42 = vrot.slane %v1782_v36, 4 }
 0x1bd   :  { %v1785_v14 = vrot.slane %v1784_v62, 2  ;;  %v1790_v15 = vmax.f32 %v1782_v36, %v1789_v42 }
 0x1bf   :  { %v1786_v12 = vmax.f32 %v1784_v62, %v1785_v14  ;;  %v1791_v5 = vrot.slane %v1790_v15, 2 }
 0x1c1   :  { %v1787_v35 = vrot.slane %v1786_v12, 1  ;;  %v1792_v33 = vmax.f32 %v1790_v15, %v1791_v5 }
 0x1c3   :  { %v1788_v25 = vmax.f32 %v1786_v12, %v1787_v35  ;;  %v1793_v41 = vrot.slane %v1792_v33, 1 }
 0x1c5   :  { %v1795_v9 = vsub.f32 %v1781_v1, %v1788_v25  ;;  %v1794_v0 = vmax.f32 %v1792_v33, %v1793_v41  ;;  %v2468_v1 = vld [vmem:[#allocation2 + $0x50] sm:$0xff] }
 0x1c7   :  { %v1797_v11 = vmul.f32 1.442695, %v1795_v9  ;;  %v1796_v60 = vsub.f32 %v1782_v36, %v1794_v0 }
 0x1c9   :  { %2455 = vpow2.f32 %v1797_v11  ;;  %v1799_v29 = vmul.f32 1.442695, %v1796_v60 }
 0x1cb   :  { %2457 = vpow2.f32 %v1799_v29 }
 0x1d3   :  { %v2456_v2 = vpop.eup %2455 }
 0x1d4   :  { %v1801_v8 = vrot.slane %v2456_v2, 4 }
 0x1d5   :  { %v2458_v51 = vpop.eup %2457 }
 0x1d6   :  { %v1802_v18 = vadd.f32 %v2456_v2, %v1801_v8  ;;  %v1807_v4 = vrot.slane %v2458_v51, 4 }
 0x1d8   :  { %v1803_v39 = vrot.slane %v1802_v18, 2  ;;  %v1808_v52 = vadd.f32 %v2458_v51, %v1807_v4 }
 0x1da   :  { %v1804_v26 = vadd.f32 %v1803_v39, %v1802_v18  ;;  %v1809_v21 = vrot.slane %v1808_v52, 2 }
 0x1dc   :  { %v1805_v3 = vrot.slane %v1804_v26, 1  ;;  %v1810_v45 = vadd.f32 %v1809_v21, %v1808_v52 }
 0x1de   :  { %v1806_v59 = vadd.f32 %v1805_v3, %v1804_v26  ;;  %v1811_v49 = vrot.slane %v1810_v45, 1 }
 0x1e0   :  { %2459 = vrcp.f32 %v1806_v59  ;;  %v1812_v20 = vadd.f32 %v1811_v49, %v1810_v45 }
 0x1e2   :  { %2461 = vrcp.f32 %v1812_v20 }
 0x1ea   :  { %v2460_v55 = vpop.eup %2459 }
 0x1eb   :  { %v3531_v7 = vmul.f32 %v2460_v55, %v2456_v2 }
 0x1ec   :  { %v2462_v40 = vpop.eup %2461 }
 0x1ed   :  { %2009 = vst [vmem:[#allocation6] sm:$0xff] %v3531_v7  ;;  %v3535_v13 = vmul.f32 %v2462_v40, %v2458_v51  ;;  %v1820_v16 = vrot.slane %v3531_v7, %v1819_v46  ;;  %v1836_v57 = vrot.slane %v3531_v7, %v1835_v53  ;;  %v3545_v38 = vrot.slane %v3531_v7, %v1859_v27 }
 0x1ee   :  { %v3550_v32 = vrot.slane %v3531_v7, %v1883_v61 }
 0x1ef   :  { %2010 = vst [vmem:[#allocation6 + $0x8] sm:$0xff] %v3535_v13  ;;  %v1824_v58 = vrot.slane %v3535_v13, %v1819_v46  ;;  %v1825_v50 = vmul.f32 %v2463_v48, %v1820_v16  ;;  %v1827_v23 = vmul.f32 %v2464_v6, %v1820_v16  ;;  %v1829_v54 = vmul.f32 %v2465_v34, %v1820_v16 }
 0x1f0   :  { %v1831_v24 = vmul.f32 %v2466_v63, %v1820_v16  ;;  %v1840_v44 = vrot.slane %v3535_v13, %v1835_v53  ;;  %v1841_v31 = vmul.f32 %v2467_v19, %v1836_v57  ;;  %v1843_v30 = vmul.f32 %v2468_v1, %v1836_v57 }
 0x1f1   :  { %2560 = shalt.err (!%p2557_p12)
}
 0x1f2   :  { %s2561_s2 = scalar_lea.hbm %s3652_s7, 256 }
 0x1f3   :  { %p2562_p13 = scmp.ne.s32.totalorder %s3652_s7, %s2561_s2  ;;  %p2565_p0 = scmp.lt.u32.totalorder %s2561_s2, %s3652_s7 }
 0x1f5   :  { %p2567_p1 = pnand %p2565_p0, %p2562_p13 }
 0x1f7   :  { %2570 = shalt.err (!%p2567_p1)
}
 0x1f8   :  { %2032 = dma.vmem_to_hbm [thread:$0]  %s3540_s21, 256, %s3652_s7, [#allocation7]   ;;  %v2469_v28 = vld [vmem:[#allocation2 + $0x8] sm:$0xff]  ;;  %v2470_v36 = vld [vmem:[#allocation2 + $0x18] sm:$0xff]  ;;  %v2475_v41 = vld [vmem:[#allocation2 + $0x60] sm:$0xff]  ;;  %v3577_v51 = vrot.slane %v3531_v7, %v1907_v47  ;;  %v3582_v18 = vrot.slane %v3531_v7, %v1931_v10  ;;  %v1849_v4 = vadd.f32 %v1841_v31, %v1825_v50  ;;  %v1851_v52 = vadd.f32 %v1843_v30, %v1827_v23 }
 0x1f9   :  { %v1826_v37 = vmul.f32 %v2469_v28, %v1824_v58  ;;  %v1828_v62 = vmul.f32 %v2470_v36, %v1824_v58  ;;  %v2471_v42 = vld [vmem:[#allocation2 + $0x28] sm:$0xff]  ;;  %v2472_v15 = vld [vmem:[#allocation2 + $0x38] sm:$0xff]  ;;  %v1845_v9 = vmul.f32 %v2475_v41, %v1836_v57  ;;  %v2477_v60 = vld [vmem:[#allocation2 + $0x70] sm:$0xff]  ;;  %v3587_v26 = vrot.slane %v3531_v7, %v1955_v17  ;;  %s2605_s7 = smov [#allocation5]  }
 0x1fa   :  { %v1830_v14 = vmul.f32 %v2471_v42, %v1824_v58  ;;  %v1832_v12 = vmul.f32 %v2472_v15, %v1824_v58  ;;  %v2473_v5 = vld [vmem:[#allocation2 + $0x48] sm:$0xff]  ;;  %v2474_v33 = vld [vmem:[#allocation2 + $0x58] sm:$0xff]  ;;  %v1847_v29 = vmul.f32 %v2477_v60, %v1836_v57  ;;  %v1864_v59 = vrot.slane %v3535_v13, %v1859_v27  ;;  %v2479_v56 = vld [vmem:[#allocation2 + $0x80] sm:$0xff]  ;;  %s2016_s0 = sshll.u32 %s2605_s7, 4  ;;  %s2017_s0 = int_to_ptr.vmem [resolvable:$true] %s2016_s0 }
 0x1fb   :  { %v1842_v35 = vmul.f32 %v2473_v5, %v1840_v44  ;;  %v1844_v25 = vmul.f32 %v2474_v33, %v1840_v44  ;;  %v2476_v0 = vld [vmem:[#allocation2 + $0x68] sm:$0xff]  ;;  %v2478_v2 = vld [vmem:[#allocation2 + $0x78] sm:$0xff]  ;;  %v1853_v3 = vadd.f32 %v1845_v9, %v1829_v54  ;;  %v1865_v46 = vmul.f32 %v2479_v56, %v3545_v38  ;;  %v2480_v53 = vld [vmem:[#allocation2 + $0x90] sm:$0xff]  ;;  %s2571_s30 = scalar_lea.vmem %s2017_s0, 1024  ;;  %p2576_p3 = scmp.lt.s32.totalorder %s2017_s0, %s2017_s0 }
 0x1fc   :  { %v1846_v11 = vmul.f32 %v2476_v0, %v1840_v44  ;;  %v1848_v8 = vmul.f32 %v2478_v2, %v1840_v44  ;;  %v1855_v49 = vadd.f32 %v1847_v29, %v1831_v24  ;;  %v1867_v55 = vmul.f32 %v2480_v53, %v3545_v38  ;;  %v2481_v40 = vld [vmem:[#allocation2 + $0x88] sm:$0xff]  ;;  %v2482_v57 = vld [vmem:[#allocation2 + $0x98] sm:$0xff]  ;;  %v2483_v48 = vld [vmem:[#allocation2 + $0xa0] sm:$0xff]  ;;  %p2572_p2 = scmp.ne.s32.totalorder %s2017_s0, %s2571_s30  ;;  %p2577_p4 = scmp.lt.s32.totalorder %s2571_s30, %s2571_s30 }
 0x1fd   :  { %v1850_v39 = vadd.f32 %v1842_v35, %v1826_v37  ;;  %v1852_v21 = vadd.f32 %v1844_v25, %v1828_v62  ;;  %v1866_v16 = vmul.f32 %v2481_v40, %v1864_v59  ;;  %v1868_v58 = vmul.f32 %v2482_v57, %v1864_v59  ;;  %v2484_v27 = vld [vmem:[#allocation2 + $0xa8] sm:$0xff]  ;;  %v2485_v34 = vld [vmem:[#allocation2 + $0xb0] sm:$0xff]  ;;  %v2486_v63 = vld [vmem:[#allocation2 + $0xb8] sm:$0xff] }
 0x1fe   :  { %v1854_v45 = vadd.f32 %v1846_v11, %v1830_v14  ;;  %v1856_v20 = vadd.f32 %v1848_v8, %v1832_v12  ;;  %v1869_v50 = vmul.f32 %v2483_v48, %v3545_v38  ;;  %v1888_v6 = vrot.slane %v3535_v13, %v1883_v61  ;;  %v2487_v62 = vld [vmem:[#allocation2 + $0xc0] sm:$0xff]  ;;  %v2488_v14 = vld [vmem:[#allocation2 + $0xc8] sm:$0xff]  ;;  %v2489_v15 = vld [vmem:[#allocation2 + $0xd0] sm:$0xff]  ;;  %p2578_p5 = por %p2577_p4, %p2576_p3 }
 0x1ff   :  { %v1870_v23 = vmul.f32 %v2484_v27, %v1864_v59  ;;  %v1871_v54 = vmul.f32 %v2485_v34, %v3545_v38  ;;  %v1872_v24 = vmul.f32 %v2486_v63, %v1864_v59  ;;  %v1873_v44 = vadd.f32 %v1865_v46, %v1849_v4  ;;  %v2490_v5 = vld [vmem:[#allocation2 + $0xd8] sm:$0xff]  ;;  %v2491_v35 = vld [vmem:[#allocation2 + $0xe0] sm:$0xff]  ;;  %v2492_v25 = vld [vmem:[#allocation2 + $0xe8] sm:$0xff] }
 0x200   :  { %v1874_v19 = vadd.f32 %v1866_v16, %v1850_v39  ;;  %v1875_v31 = vadd.f32 %v1867_v55, %v1851_v52  ;;  %v1876_v1 = vadd.f32 %v1868_v58, %v1852_v21  ;;  %v1877_v30 = vadd.f32 %v1869_v50, %v1853_v3  ;;  %v2493_v9 = vld [vmem:[#allocation2 + $0xf0] sm:$0xff]  ;;  %v2494_v11 = vld [vmem:[#allocation2 + $0xf8] sm:$0xff]  ;;  %v2495_v59 = vld [vmem:[#allocation2 + $0x100] sm:$0xff]  ;;  %p2579_p6 = pnand %p2578_p5, %p2572_p2 }
 0x201   :  { %v1878_v28 = vadd.f32 %v1870_v23, %v1854_v45  ;;  %v1879_v37 = vadd.f32 %v1871_v54, %v1855_v49  ;;  %v1880_v36 = vadd.f32 %v1872_v24, %v1856_v20  ;;  %v1889_v42 = vmul.f32 %v2487_v62, %v3550_v32  ;;  %v2496_v20 = vld [vmem:[#allocation2 + $0x110] sm:$0xff]  ;;  %v2497_v56 = vld [vmem:[#allocation2 + $0x120] sm:$0xff]  ;;  %v2498_v55 = vld [vmem:[#allocation2 + $0x108] sm:$0xff] }
 0x202   :  { %v1890_v61 = vmul.f32 %v2488_v14, %v1888_v6  ;;  %v1891_v12 = vmul.f32 %v2489_v15, %v3550_v32  ;;  %v1892_v38 = vmul.f32 %v2490_v5, %v1888_v6  ;;  %v1893_v33 = vmul.f32 %v2491_v35, %v3550_v32  ;;  %v2499_v16 = vld [vmem:[#allocation2 + $0x118] sm:$0xff]  ;;  %v2500_v58 = vld [vmem:[#allocation2 + $0x130] sm:$0xff]  ;;  %v2501_v48 = vld [vmem:[#allocation2 + $0x140] sm:$0xff] }
 0x203   :  { %v1894_v41 = vmul.f32 %v2492_v25, %v1888_v6  ;;  %v1895_v0 = vmul.f32 %v2493_v9, %v3550_v32  ;;  %v1896_v60 = vmul.f32 %v2494_v11, %v1888_v6  ;;  %v1897_v29 = vadd.f32 %v1889_v42, %v1873_v44  ;;  %v2502_v6 = vld [vmem:[#allocation2 + $0x128] sm:$0xff]  ;;  %v2503_v23 = vld [vmem:[#allocation2 + $0x138] sm:$0xff]  ;;  %v2507_v42 = vld [vmem:[#allocation2 + $0x160] sm:$0xff] }
 0x204   :  { %v1898_v2 = vadd.f32 %v1890_v61, %v1874_v19  ;;  %v1899_v8 = vadd.f32 %v1891_v12, %v1875_v31  ;;  %v1900_v4 = vadd.f32 %v1892_v38, %v1876_v1  ;;  %v1901_v39 = vadd.f32 %v1893_v33, %v1877_v30  ;;  %v2504_v30 = vld [vmem:[#allocation2 + $0x148] sm:$0xff]  ;;  %v2509_v12 = vld [vmem:[#allocation2 + $0x170] sm:$0xff]  ;;  %v2510_v38 = vld [vmem:[#allocation2 + $0x178] sm:$0xff] }
 0x205   :  { %v1902_v52 = vadd.f32 %v1894_v41, %v1878_v28  ;;  %v1903_v21 = vadd.f32 %v1895_v0, %v1879_v37  ;;  %v1904_v3 = vadd.f32 %v1896_v60, %v1880_v36  ;;  %v1912_v45 = vrot.slane %v3535_v13, %v1907_v47  ;;  %v2505_v37 = vld [vmem:[#allocation2 + $0x150] sm:$0xff]  ;;  %v2506_v36 = vld [vmem:[#allocation2 + $0x158] sm:$0xff]  ;;  %v2508_v61 = vld [vmem:[#allocation2 + $0x168] sm:$0xff] }
 0x206   :  { %v1913_v49 = vmul.f32 %v2495_v59, %v3577_v51  ;;  %v1915_v32 = vmul.f32 %v2496_v20, %v3577_v51  ;;  %v1917_v46 = vmul.f32 %v2497_v56, %v3577_v51  ;;  %v1936_v53 = vrot.slane %v3535_v13, %v1931_v10  ;;  %v2515_v59 = vld [vmem:[#allocation2 + $0x1b0] sm:$0xff]  ;;  %v2516_v20 = vld [vmem:[#allocation2 + $0x198] sm:$0xff]  ;;  %v2517_v56 = vld [vmem:[#allocation2 + $0x1a8] sm:$0xff] }
 0x207   :  { %v1914_v40 = vmul.f32 %v2498_v55, %v1912_v45  ;;  %v1916_v57 = vmul.f32 %v2499_v16, %v1912_v45  ;;  %v1919_v47 = vmul.f32 %v2500_v58, %v3577_v51  ;;  %v1937_v50 = vmul.f32 %v2501_v48, %v3582_v18 }
 0x208   :  { %v1918_v27 = vmul.f32 %v2502_v6, %v1912_v45  ;;  %v1920_v34 = vmul.f32 %v2503_v23, %v1912_v45  ;;  %v1921_v54 = vadd.f32 %v1913_v49, %v1897_v29  ;;  %v1923_v63 = vadd.f32 %v1915_v32, %v1899_v8  ;;  %v2511_v8 = vld [vmem:[#allocation2 + $0x180] sm:$0xff]  ;;  %v2520_v23 = vld [vmem:[#allocation2 + $0x1d0] sm:$0xff] }
 0x209   :  { %v1922_v24 = vadd.f32 %v1914_v40, %v1898_v2  ;;  %v1924_v44 = vadd.f32 %v1916_v57, %v1900_v4  ;;  %v1925_v19 = vadd.f32 %v1917_v46, %v1901_v39  ;;  %v1927_v10 = vadd.f32 %v1919_v47, %v1903_v21  ;;  %v2512_v39 = vld [vmem:[#allocation2 + $0x190] sm:$0xff] }
 0x20a   :  { %v1926_v31 = vadd.f32 %v1918_v27, %v1902_v52  ;;  %v1928_v1 = vadd.f32 %v1920_v34, %v1904_v3  ;;  %v1938_v28 = vmul.f32 %v2504_v30, %v1936_v53  ;;  %v1939_v51 = vmul.f32 %v2505_v37, %v3582_v18  ;;  %v2513_v52 = vld [vmem:[#allocation2 + $0x188] sm:$0xff]  ;;  %v2514_v3 = vld [vmem:[#allocation2 + $0x1a0] sm:$0xff]  ;;  %v2526_v37 = vld [vmem:[#allocation2 + $0x1f8] sm:$0xff] }
 0x20b   :  { %v1940_v62 = vmul.f32 %v2506_v36, %v1936_v53  ;;  %v1941_v14 = vmul.f32 %v2507_v42, %v3582_v18  ;;  %v1942_v15 = vmul.f32 %v2508_v61, %v1936_v53  ;;  %v1943_v5 = vmul.f32 %v2509_v12, %v3582_v18  ;;  %v2519_v27 = vld [vmem:[#allocation2 + $0x1c0] sm:$0xff]  ;;  %v2525_v30 = vld [vmem:[#allocation2 + $0x1e8] sm:$0xff] }
 0x20c   :  { %v1944_v35 = vmul.f32 %v2510_v38, %v1936_v53  ;;  %v1945_v33 = vadd.f32 %v1937_v50, %v1921_v54  ;;  %v1946_v25 = vadd.f32 %v1938_v28, %v1922_v24  ;;  %v1947_v41 = vadd.f32 %v1939_v51, %v1923_v63  ;;  %v2518_v53 = vld [vmem:[#allocation2 + $0x1b8] sm:$0xff]  ;;  %v2521_v54 = vld [vmem:[#allocation2 + $0x1e0] sm:$0xff]  ;;  %v2522_v24 = vld [vmem:[#allocation2 + $0x1f0] sm:$0xff] }
 0x20d   :  { %v1948_v9 = vadd.f32 %v1940_v62, %v1924_v44  ;;  %v1949_v0 = vadd.f32 %v1941_v14, %v1925_v19  ;;  %v1951_v11 = vadd.f32 %v1943_v5, %v1927_v10  ;;  %v1960_v60 = vrot.slane %v3535_v13, %v1955_v17  ;;  %v2523_v19 = vld [vmem:[#allocation2 + $0x1c8] sm:$0xff] }
 0x20e   :  { %v1950_v29 = vadd.f32 %v1942_v15, %v1926_v31  ;;  %v1952_v2 = vadd.f32 %v1944_v35, %v1928_v1  ;;  %v1961_v4 = vmul.f32 %v2511_v8, %v3587_v26  ;;  %v1963_v18 = vmul.f32 %v2512_v39, %v3587_v26  ;;  %v2524_v31 = vld [vmem:[#allocation2 + $0x1d8] sm:$0xff] }
 0x20f   :  { %v1962_v21 = vmul.f32 %v2513_v52, %v1960_v60  ;;  %v1965_v45 = vmul.f32 %v2514_v3, %v3587_v26  ;;  %v1967_v49 = vmul.f32 %v2515_v59, %v3587_v26  ;;  %v1980_v17 = vrot.slane %v3531_v7, %v1979_v43 }
 0x210   :  { %v1964_v32 = vmul.f32 %v2516_v20, %v1960_v60  ;;  %v1966_v46 = vmul.f32 %v2517_v56, %v1960_v60  ;;  %v1968_v55 = vmul.f32 %v2518_v53, %v1960_v60  ;;  %v1969_v40 = vadd.f32 %v1961_v4, %v1945_v33 }
 0x211   :  { %v1970_v16 = vadd.f32 %v1962_v21, %v1946_v25  ;;  %v1971_v57 = vadd.f32 %v1963_v18, %v1947_v41  ;;  %v1973_v58 = vadd.f32 %v1965_v45, %v1949_v0  ;;  %v1975_v47 = vadd.f32 %v1967_v49, %v1951_v11 }
 0x212   :  { %v1972_v48 = vadd.f32 %v1964_v32, %v1948_v9  ;;  %v1974_v50 = vadd.f32 %v1966_v46, %v1950_v29  ;;  %v1976_v6 = vadd.f32 %v1968_v55, %v1952_v2  ;;  %v1984_v26 = vrot.slane %v3535_v13, %v1979_v43 }
 0x213   :  { %v1985_v7 = vmul.f32 %v2519_v27, %v1980_v17  ;;  %v1987_v34 = vmul.f32 %v2520_v23, %v1980_v17  ;;  %v1989_v63 = vmul.f32 %v2521_v54, %v1980_v17  ;;  %v1991_v44 = vmul.f32 %v2522_v24, %v1980_v17 }
 0x214   :  { %v1986_v10 = vmul.f32 %v2523_v19, %v1984_v26  ;;  %v1988_v1 = vmul.f32 %v2524_v31, %v1984_v26  ;;  %v1990_v28 = vmul.f32 %v2525_v30, %v1984_v26  ;;  %v1992_v22 = vmul.f32 %v2526_v37, %v1984_v26 }
 0x215   :  { %v1993_v51 = vadd.f32 %v1985_v7, %v1969_v40  ;;  %v1995_v13 = vadd.f32 %v1987_v34, %v1971_v57  ;;  %v1997_v43 = vadd.f32 %v1989_v63, %v1973_v58  ;;  %v1999_v36 = vadd.f32 %v1991_v44, %v1975_v47 }
 0x216   :  { %v1994_v62 = vadd.f32 %v1986_v10, %v1970_v16  ;;  %v1996_v42 = vadd.f32 %v1988_v1, %v1972_v48  ;;  %v1998_v14 = vadd.f32 %v1990_v28, %v1974_v50  ;;  %v2000_v61 = vadd.f32 %v1992_v22, %v1976_v6 }
 0x217   :  { %2001 = vst [vmem:[#allocation5] sm:$0xff] %v1993_v51  ;;  %2003 = vst [vmem:[#allocation5 + $0x10] sm:$0xff] %v1995_v13 }
 0x218   :  { %2005 = vst [vmem:[#allocation5 + $0x20] sm:$0xff] %v1997_v43  ;;  %2007 = vst [vmem:[#allocation5 + $0x30] sm:$0xff] %v1999_v36 }
 0x219   :  { %2002 = vst [vmem:[#allocation5 + $0x8] sm:$0xff] %v1994_v62  ;;  %2004 = vst [vmem:[#allocation5 + $0x18] sm:$0xff] %v1996_v42 }
 0x21a   :  { %2006 = vst [vmem:[#allocation5 + $0x28] sm:$0xff] %v1998_v14  ;;  %2008 = vst [vmem:[#allocation5 + $0x38] sm:$0xff] %v2000_v61 }
 0x21b   :  { %2582 = shalt.err (!%p2579_p6)
}
 0x21c   :  { %s2583_s10 = scalar_lea.hbm %s3651_s6, 1024 }
 0x21d   :  { %p2584_p7 = scmp.ne.s32.totalorder %s3651_s6, %s2583_s10  ;;  %p2587_p8 = scmp.lt.u32.totalorder %s2583_s10, %s3651_s6 }
 0x21f   :  { %p2589_p9 = pnand %p2587_p8, %p2584_p7 }
 0x221   :  { %2592 = shalt.err (!%p2589_p9)
}
 0x222   :  { %2022 = dma.vmem_to_hbm [thread:$0]  %s2017_s0, 1024, %s3651_s6, [#allocation4], %s2600_s11, %s2600_s11, %s2601_s12  }
 0x223   :  { %2595 = dma.done.wait [#allocation4], 1024  }
 0x224   :  { %2596 = vsyncadd [#allocation4], 4294966272 }
 0x225   :  { %2597 = dma.done.wait [#allocation7], 256  }
 0x226   :  { %2598 = vsyncadd [#allocation7], 4294967040 }
 0x227   :  { %2039 = vsyncpa [#allocation3], 1 }
 0x228   :  { %2040 = vsyncpa [#allocation4], 1 }
 0x229   :  { %2041 = vsyncpa [#allocation7], 1 }

</bundles_post_ra>
